<compile_context>
chip_gen: v5e
topology: v5e:2x2
jax: 0.10.0
libtpu: 0.0.40
codegen_flags: <defaults>
</compile_context>

<pallas_src>
import numpy as np
import jax
import jax.numpy as jnp
from jax.experimental import pallas as pl
from jax.experimental.pallas import tpu as pltpu

# Scaled-down config (original: EMBED=512, HEADS=8, LAYERS=8, FFN=2048, big vocab)
EMBED_SIZE = 128
NUM_HEADS = 4
DK = EMBED_SIZE // NUM_HEADS
DV = EMBED_SIZE // NUM_HEADS
NUM_LAYERS = 2
FFN_DIM = 256
SEQ = 16
VOCAB_SIZE = 32
PAD_IDX = 0
BATCH_SIZE = 1          # module hardcodes batch = 1 (batch dim squeezed here)
LN_EPS = 1e-5
NEG_INF = -10000.0


# ---------------------------------------------------------------------------
# Fused encoder kernel: grid axis = layer index.
#   l == 0      : embedding (one-hot matmul) + positional encoding -> o_ref
#   every step  : x = o_ref; fused QKV -> per-head SDPA -> concat -> Wo ->
#                 +res -> LN -> FFN -> +res -> LN; result written back to o_ref
# o_ref's block index is constant across the grid, so it stays resident in
# VMEM and carries the activation from layer to layer.
# ---------------------------------------------------------------------------
def _encoder_kernel(tok_ref, emb_ref, pe_ref, bias_ref,
                    wqkv_ref, bqkv_ref, wo_ref, bo_ref, g1_ref, be1_ref,
                    w1_ref, b1_ref, w2_ref, b2_ref, g2_ref, be2_ref,
                    o_ref):
    l = pl.program_id(0)

    @pl.when(l == 0)
    def _():
        # Embedding lookup as a one-hot matmul (padding_idx row of the table is
        # zero, matching nn.Embedding(padding_idx=0)), plus positional encoding.
        S = tok_ref.shape[0]
        V = emb_ref.shape[0]
        iota = jax.lax.broadcasted_iota(jnp.int32, (S, V), 1)
        onehot = (iota == tok_ref[...]).astype(jnp.float32)            # (S, V)
        o_ref[...] = (jnp.dot(onehot, emb_ref[...],
                              preferred_element_type=jnp.float32)
                      + pe_ref[...])

    x = o_ref[...]                                                     # (S, E) f32
    E = x.shape[-1]

    # fused QKV projection: (S,E)bf16 @ (E,3E)bf16 -> f32, + (1,3E) bias row
    qkv = jnp.dot(x.astype(jnp.bfloat16), wqkv_ref[...],
                  preferred_element_type=jnp.float32) + bqkv_ref[...]

    inv_scale = jnp.float32(1.0 / np.sqrt(DK))
    bias = bias_ref[...]                                               # (1, S) additive

    heads = []
    for h in range(NUM_HEADS):                                         # static unroll
        q = qkv[:, h * DK:(h + 1) * DK]
        k = qkv[:, E + h * DK:E + (h + 1) * DK]
        v = qkv[:, 2 * E + h * DV:2 * E + (h + 1) * DV]
        # contracting-dim dot: avoids materializing k.T through the XLU
        s = jax.lax.dot_general(q, k, (((1,), (1,)), ((), ())),
                                preferred_element_type=jnp.float32)
        s = s * inv_scale + bias                                       # (S,S)+(1,S)
        m = jnp.max(s, axis=-1, keepdims=True)
        e = jnp.exp(s - m)
        p = e * pl.reciprocal(jnp.sum(e, axis=-1, keepdims=True), approx=True)
        heads.append(jnp.dot(p, v, preferred_element_type=jnp.float32))
    z = jnp.concatenate(heads, axis=-1)                                # (S, H*DV)

    # output projection + dropout(identity) + residual + LayerNorm
    # TODO(synk): nn.Dropout(0.3) is the identity in eval mode; training-mode
    # dropout (PRNG masking + 1/(1-p) scaling) is not implemented.
    y = jnp.dot(z.astype(jnp.bfloat16), wo_ref[...],
                preferred_element_type=jnp.float32) + bo_ref[...]
    r = x + y
    mu = jnp.mean(r, axis=-1, keepdims=True)
    var = jnp.mean((r - mu) ** 2, axis=-1, keepdims=True)
    a1 = (r - mu) * jax.lax.rsqrt(var + LN_EPS) * g1_ref[...] + be1_ref[...]

    # FFN: Linear -> ReLU -> Linear, + residual + LayerNorm
    hdn = jnp.dot(a1.astype(jnp.bfloat16), w1_ref[...],
                  preferred_element_type=jnp.float32) + b1_ref[...]
    hdn = jnp.maximum(hdn, 0.0)
    y2 = jnp.dot(hdn.astype(jnp.bfloat16), w2_ref[...],
                 preferred_element_type=jnp.float32) + b2_ref[...]
    r2 = a1 + y2
    mu2 = jnp.mean(r2, axis=-1, keepdims=True)
    var2 = jnp.mean((r2 - mu2) ** 2, axis=-1, keepdims=True)
    o_ref[...] = (r2 - mu2) * jax.lax.rsqrt(var2 + LN_EPS) * g2_ref[...] + be2_ref[...]


# ---------------------------------------------------------------------------
# Wrapper: single pallas_call for the full encoder (batch = 1, batch squeezed).
# tokens: (S,) int32, pad_mask: (S,) bool (True == masked / padding key).
# stacked: per-layer weights stacked along a leading layer dim
#          (wqkv/wo/w1/w2 in bf16, everything else f32).
# ---------------------------------------------------------------------------
def encoder_forward(tokens, pad_mask, stacked, embed, pe):
    S = tokens.shape[0]
    E = EMBED_SIZE
    tok2d = tokens.reshape(S, 1).astype(jnp.int32)
    # additive attention mask row (shared across heads/rows): 0 keep, -1e4 masked
    bias = jnp.where(pad_mask, jnp.float32(NEG_INF),
                     jnp.float32(0.0)).reshape(1, S).astype(jnp.float32)

    VM = pltpu.MemorySpace.VMEM

    def const_spec(shape):     # same block every layer step -> DMA'd once
        return pl.BlockSpec(shape, lambda l: (0,) * len(shape), memory_space=VM)

    def layer_spec(shape):     # leading layer dim squeezed; streamed per step
        n = len(shape)
        return pl.BlockSpec((None,) + shape, lambda l: (l,) + (0,) * n,
                            memory_space=VM)

    in_specs = [
        const_spec((S, 1)),                 # tokens
        const_spec((VOCAB_SIZE, E)),        # embedding table
        const_spec((S, E)),                 # positional encoding
        const_spec((1, S)),                 # additive mask row
        layer_spec((E, 3 * E)),             # wqkv  (bf16)
        layer_spec((1, 3 * E)),             # bqkv
        layer_spec((E, E)),                 # wo    (bf16)
        layer_spec((1, E)),                 # bo
        layer_spec((1, E)),                 # ln1 gamma
        layer_spec((1, E)),                 # ln1 beta
        layer_spec((E, FFN_DIM)),           # w1    (bf16)
        layer_spec((1, FFN_DIM)),           # b1
        layer_spec((FFN_DIM, E)),           # w2    (bf16)
        layer_spec((1, E)),                 # b2
        layer_spec((1, E)),                 # ln2 gamma
        layer_spec((1, E)),                 # ln2 beta
    ]
    out_spec = pl.BlockSpec((S, E), lambda l: (0, 0), memory_space=VM)

    return pl.pallas_call(
        _encoder_kernel,
        out_shape=jax.ShapeDtypeStruct((S, E), jnp.float32),
        grid_spec=pltpu.PrefetchScalarGridSpec(
            num_scalar_prefetch=0,
            grid=(NUM_LAYERS,),
            in_specs=in_specs,
            out_specs=out_spec),
        compiler_params=pltpu.CompilerParams(
            dimension_semantics=("arbitrary",),
            vmem_limit_bytes=32 * 1024 * 1024),
    )(tok2d, embed, pe, bias,
      stacked["wqkv"], stacked["bqkv"], stacked["wo"], stacked["bo"],
      stacked["g1"], stacked["b1ln"],
      stacked["w1"], stacked["b1"], stacked["w2"], stacked["b2"],
      stacked["g2"], stacked["b2ln"])


# ---------------------------------------------------------------------------
# Pure-JAX reference (HIGHEST precision, f32 weights) for correctness check.
# ---------------------------------------------------------------------------
def reference(tokens, pad_mask, layers, embed, pe):
    P = jax.lax.Precision.HIGHEST
    S = tokens.shape[0]
    E = EMBED_SIZE
    h = embed[tokens] + pe
    bias = jnp.where(pad_mask, jnp.float32(NEG_INF), jnp.float32(0.0)).reshape(1, S)
    for lp in layers:
        x = h
        qkv = jnp.dot(x, lp["wqkv"], precision=P) + lp["bqkv"]
        q, k, v = qkv[:, :E], qkv[:, E:2 * E], qkv[:, 2 * E:]
        qh = q.reshape(S, NUM_HEADS, DK).transpose(1, 0, 2)
        kh = k.reshape(S, NUM_HEADS, DK).transpose(1, 0, 2)
        vh = v.reshape(S, NUM_HEADS, DV).transpose(1, 0, 2)
        s = jnp.einsum("hqd,hkd->hqk", qh, kh, precision=P) / np.sqrt(DK) + bias
        a = jax.nn.softmax(s, axis=-1)
        z = jnp.einsum("hqk,hkd->hqd", a, vh, precision=P)
        z = z.transpose(1, 0, 2).reshape(S, NUM_HEADS * DV)
        y = jnp.dot(z, lp["wo"], precision=P) + lp["bo"]
        r = x + y
        mu = r.mean(-1, keepdims=True)
        var = ((r - mu) ** 2).mean(-1, keepdims=True)
        a1 = (r - mu) * jax.lax.rsqrt(var + LN_EPS) * lp["g1"] + lp["b1ln"]
        hdn = jnp.maximum(jnp.dot(a1, lp["w1"], precision=P) + lp["b1"], 0.0)
        y2 = jnp.dot(hdn, lp["w2"], precision=P) + lp["b2"]
        r2 = a1 + y2
        mu2 = r2.mean(-1, keepdims=True)
        var2 = ((r2 - mu2) ** 2).mean(-1, keepdims=True)
        h = (r2 - mu2) * jax.lax.rsqrt(var2 + LN_EPS) * lp["g2"] + lp["b2ln"]
    return h


if __name__ == "__main__":
    key = jax.random.PRNGKey(0)
    k_tok, k_emb, *k_layers = jax.random.split(key, 2 + NUM_LAYERS)

    tokens = jax.random.randint(k_tok, (SEQ,), 1, VOCAB_SIZE, dtype=jnp.int32)
    tokens = tokens.at[-3:].set(PAD_IDX)          # a few padding positions
    pad_mask = tokens == PAD_IDX                  # True == masked key (padding)

    embed = jax.random.normal(k_emb, (VOCAB_SIZE, EMBED_SIZE), jnp.float32)
    embed = embed.at[PAD_IDX].set(0.0)            # nn.Embedding padding_idx row = 0

    # sinusoidal positional encoding (as in pos_encoder)
    pos = jnp.arange(SEQ, dtype=jnp.float32)[:, None]
    freq = jnp.exp(-np.log(10000.0)
                   * jnp.arange(0, EMBED_SIZE, 2, dtype=jnp.float32) / EMBED_SIZE)
    ang = pos * freq[None, :]
    pe = jnp.stack([jnp.sin(ang), jnp.cos(ang)], axis=-1).reshape(SEQ, EMBED_SIZE)

    def w_init(k, shape, scale=0.05):
        return scale * jax.random.normal(k, shape, jnp.float32)

    layers = []
    for kl in k_layers:
        ks = jax.random.split(kl, 12)
        lp = dict(
            wqkv=w_init(ks[0], (EMBED_SIZE, 3 * EMBED_SIZE)),   # fused [Wq|Wk|Wv]
            bqkv=w_init(ks[1], (1, 3 * EMBED_SIZE)),
            wo=w_init(ks[2], (NUM_HEADS * DV, EMBED_SIZE)),
            bo=w_init(ks[3], (1, EMBED_SIZE)),
            g1=1.0 + w_init(ks[4], (1, EMBED_SIZE), 0.02),
            b1ln=w_init(ks[5], (1, EMBED_SIZE), 0.02),
            w1=w_init(ks[6], (EMBED_SIZE, FFN_DIM)),
            b1=w_init(ks[7], (1, FFN_DIM)),
            w2=w_init(ks[8], (FFN_DIM, EMBED_SIZE)),
            b2=w_init(ks[9], (1, EMBED_SIZE)),
            g2=1.0 + w_init(ks[10], (1, EMBED_SIZE), 0.02),
            b2ln=w_init(ks[11], (1, EMBED_SIZE), 0.02),
        )
        # Round MXU weight matrices to bf16 once; the kernel streams bf16 and
        # the reference uses the same rounded values (in f32), so the only
        # numerical delta is the in-kernel bf16 activation casts.
        for name in ("wqkv", "wo", "w1", "w2"):
            lp[name] = lp[name].astype(jnp.bfloat16).astype(jnp.float32)
        layers.append(lp)

    # Stack per-layer params along a leading layer dim for the single-call kernel.
    stacked = {name: jnp.stack([lp[name] for lp in layers], axis=0)
               for name in layers[0]}
    for name in ("wqkv", "wo", "w1", "w2"):
        stacked[name] = stacked[name].astype(jnp.bfloat16)

    fwd = jax.jit(encoder_forward)
    out = jax.block_until_ready(fwd(tokens, pad_mask, stacked, embed, pe))
    ref = jax.block_until_ready(reference(tokens, pad_mask, layers, embed, pe))

    # bf16 activation casts + approx-reciprocal softmax add ~1e-2 abs error.
    if not np.allclose(np.asarray(out), np.asarray(ref), atol=3e-2, rtol=3e-2):
        err = float(np.max(np.abs(np.asarray(out) - np.asarray(ref))))
        raise AssertionError(f"Pallas kernel output mismatch (max abs err {err})")

    print("KERNEL_OK")
</pallas_src>

<mosaic_0001>
module attributes {stable_mosaic.version = 11 : i64} {
  func.func @_encoder_kernel(%arg0: i32, %arg1: memref<16x1xi32, #tpu.memory_space<vmem>>, %arg2: memref<32x128xf32, #tpu.memory_space<vmem>>, %arg3: memref<16x128xf32, #tpu.memory_space<vmem>>, %arg4: memref<1x16xf32, #tpu.memory_space<vmem>>, %arg5: memref<1x128x384xbf16, #tpu.memory_space<vmem>>, %arg6: memref<1x1x384xf32, #tpu.memory_space<vmem>>, %arg7: memref<1x128x128xbf16, #tpu.memory_space<vmem>>, %arg8: memref<1x1x128xf32, #tpu.memory_space<vmem>>, %arg9: memref<1x1x128xf32, #tpu.memory_space<vmem>>, %arg10: memref<1x1x128xf32, #tpu.memory_space<vmem>>, %arg11: memref<1x128x256xbf16, #tpu.memory_space<vmem>>, %arg12: memref<1x1x256xf32, #tpu.memory_space<vmem>>, %arg13: memref<1x256x128xbf16, #tpu.memory_space<vmem>>, %arg14: memref<1x1x128xf32, #tpu.memory_space<vmem>>, %arg15: memref<1x1x128xf32, #tpu.memory_space<vmem>>, %arg16: memref<1x1x128xf32, #tpu.memory_space<vmem>>, %arg17: memref<16x128xf32, #tpu.memory_space<vmem>>) attributes {dimension_semantics = [#tpu.dimension_semantics<arbitrary>], iteration_bounds = array<i64: 2>, scalar_prefetch = 0 : i64, scratch_operands = 0 : i64, tpu.core_type = #tpu.core_type<tc>, window_params = [{pipeline_mode = #tpu.pipeline_mode<synchronous>, transform_indices = @transform_0, window_bounds = array<i64: 16, 1>}, {pipeline_mode = #tpu.pipeline_mode<synchronous>, transform_indices = @transform_1, window_bounds = array<i64: 32, 128>}, {pipeline_mode = #tpu.pipeline_mode<synchronous>, transform_indices = @transform_2, window_bounds = array<i64: 16, 128>}, {pipeline_mode = #tpu.pipeline_mode<synchronous>, transform_indices = @transform_3, window_bounds = array<i64: 1, 16>}, {transform_indices = @transform_4, window_bounds = array<i64: 1, 128, 384>}, {transform_indices = @transform_5, window_bounds = array<i64: 1, 1, 384>}, {transform_indices = @transform_6, window_bounds = array<i64: 1, 128, 128>}, {transform_indices = @transform_7, window_bounds = array<i64: 1, 1, 128>}, {transform_indices = @transform_8, window_bounds = array<i64: 1, 1, 128>}, {transform_indices = @transform_9, window_bounds = array<i64: 1, 1, 128>}, {transform_indices = @transform_10, window_bounds = array<i64: 1, 128, 256>}, {transform_indices = @transform_11, window_bounds = array<i64: 1, 1, 256>}, {transform_indices = @transform_12, window_bounds = array<i64: 1, 256, 128>}, {transform_indices = @transform_13, window_bounds = array<i64: 1, 1, 128>}, {transform_indices = @transform_14, window_bounds = array<i64: 1, 1, 128>}, {transform_indices = @transform_15, window_bounds = array<i64: 1, 1, 128>}, {pipeline_mode = #tpu.pipeline_mode<synchronous>, transform_indices = @transform_16, window_bounds = array<i64: 16, 128>}]} {
    %c0_i32 = arith.constant 0 : i32
    %0 = arith.cmpi eq, %arg0, %c0_i32 : i32
    %1 = arith.extui %0 : i1 to i32
    %c0_i32_0 = arith.constant 0 : i32
    %2 = arith.cmpi ne, %1, %c0_i32_0 : i32
    scf.if %2 {
      %171 = tpu.iota {dimensions = array<i32: 1>} : vector<16x32xi32>
      %c0_76 = arith.constant 0 : index
      %c0_77 = arith.constant 0 : index
      %172 = vector.load %arg1[%c0_76, %c0_77] : memref<16x1xi32, #tpu.memory_space<vmem>>, vector<16x1xi32>
      %173 = vector.broadcast %172 : vector<16x1xi32> to vector<16x32xi32>
      %174 = arith.cmpi eq, %171, %173 : vector<16x32xi32>
      %175 = arith.extui %174 : vector<16x32xi1> to vector<16x32xi32>
      %176 = arith.sitofp %175 : vector<16x32xi32> to vector<16x32xf32>
      %c0_78 = arith.constant 0 : index
      %c0_79 = arith.constant 0 : index
      %177 = vector.load %arg2[%c0_78, %c0_79] : memref<32x128xf32, #tpu.memory_space<vmem>>, vector<32x128xf32>
      %cst_80 = arith.constant dense<0.000000e+00> : vector<16x128xf32>
      %178 = tpu.matmul %176, %177, %cst_80 {dimension_numbers = #tpu.dot_dimension_numbers<[1], [0], [0], [1], [0, 0, 1, 1], [], []>} : vector<16x32xf32>, vector<32x128xf32>, vector<16x128xf32> -> vector<16x128xf32>
      %c0_81 = arith.constant 0 : index
      %c0_82 = arith.constant 0 : index
      %179 = vector.load %arg3[%c0_81, %c0_82] : memref<16x128xf32, #tpu.memory_space<vmem>>, vector<16x128xf32>
      %180 = arith.addf %178, %179 : vector<16x128xf32>
      %c0_83 = arith.constant 0 : index
      %c0_84 = arith.constant 0 : index
      %181 = vector.load %arg17[%c0_83, %c0_84] : memref<16x128xf32, #tpu.memory_space<vmem>>, vector<16x128xf32>
      tpu.vector_store %arg17[%c0_83, %c0_84], %180 {strides = array<i32>} : memref<16x128xf32, #tpu.memory_space<vmem>>, vector<16x128xf32>,
    } else {
    }
    %c0 = arith.constant 0 : index
    %c0_1 = arith.constant 0 : index
    %3 = vector.load %arg17[%c0, %c0_1] : memref<16x128xf32, #tpu.memory_space<vmem>>, vector<16x128xf32>
    %4 = arith.truncf %3 : vector<16x128xf32> to vector<16x128xbf16>
    %c0_2 = arith.constant 0 : index
    %c0_3 = arith.constant 0 : index
    %c0_4 = arith.constant 0 : index
    %5 = vector.load %arg5[%c0_2, %c0_3, %c0_4] : memref<1x128x384xbf16, #tpu.memory_space<vmem>>, vector<1x128x384xbf16>
    %6 = vector.shape_cast %5 : vector<1x128x384xbf16> to vector<128x384xbf16>
    %cst = arith.constant dense<0.000000e+00> : vector<16x384xf32>
    %7 = tpu.matmul %4, %6, %cst {dimension_numbers = #tpu.dot_dimension_numbers<[1], [0], [0], [1], [0, 0, 1, 1], [], []>} : vector<16x128xbf16>, vector<128x384xbf16>, vector<16x384xf32> -> vector<16x384xf32>
    %c0_5 = arith.constant 0 : index
    %c0_6 = arith.constant 0 : index
    %c0_7 = arith.constant 0 : index
    %8 = vector.load %arg6[%c0_5, %c0_6, %c0_7] : memref<1x1x384xf32, #tpu.memory_space<vmem>>, vector<1x1x384xf32>
    %9 = vector.shape_cast %8 : vector<1x1x384xf32> to vector<1x384xf32>
    %10 = vector.broadcast %9 : vector<1x384xf32> to vector<16x384xf32>
    %11 = arith.addf %7, %10 : vector<16x384xf32>
    %c0_8 = arith.constant 0 : index
    %c0_9 = arith.constant 0 : index
    %12 = vector.load %arg4[%c0_8, %c0_9] : memref<1x16xf32, #tpu.memory_space<vmem>>, vector<1x16xf32>
    %13 = vector.extract_strided_slice %11 {offsets = [0, 0], sizes = [16, 32], strides = [1, 1]} : vector<16x384xf32> to vector<16x32xf32>
    %14 = vector.extract_strided_slice %11 {offsets = [0, 128], sizes = [16, 32], strides = [1, 1]} : vector<16x384xf32> to vector<16x32xf32>
    %15 = vector.extract_strided_slice %11 {offsets = [0, 256], sizes = [16, 32], strides = [1, 1]} : vector<16x384xf32> to vector<16x32xf32>
    %cst_10 = arith.constant dense<0.000000e+00> : vector<16x16xf32>
    %16 = tpu.matmul %13, %14, %cst_10 {dimension_numbers = #tpu.dot_dimension_numbers<[1], [1], [0], [0], [0, 0, 1, 0], [], []>} : vector<16x32xf32>, vector<16x32xf32>, vector<16x16xf32> -> vector<16x16xf32>
    %cst_11 = arith.constant 0.176776692 : f32
    %17 = vector.broadcast %cst_11 : f32 to vector<16x16xf32>
    %18 = arith.mulf %16, %17 : vector<16x16xf32>
    %19 = vector.broadcast %12 : vector<1x16xf32> to vector<16x16xf32>
    %20 = arith.addf %18, %19 : vector<16x16xf32>
    %cst_12 = arith.constant dense<0xFF800000> : vector<16xf32>
    %21 = vector.multi_reduction <maximumf>, %20, %cst_12 [1] : vector<16x16xf32> to vector<16xf32>
    %22 = vector.shape_cast %21 : vector<16xf32> to vector<16x1xf32>
    %23 = vector.broadcast %22 : vector<16x1xf32> to vector<16x16xf32>
    %24 = arith.subf %20, %23 : vector<16x16xf32>
    %25 = math.exp %24 : vector<16x16xf32>
    %cst_13 = arith.constant dense<0.000000e+00> : vector<16xf32>
    %26 = vector.multi_reduction <add>, %25, %cst_13 [1] : vector<16x16xf32> to vector<16xf32>
    %27 = vector.shape_cast %26 : vector<16xf32> to vector<16x1xf32>
    %28 = tpu.reciprocal %27 {approx = true} : vector<16x1xf32> -> vector<16x1xf32>
    %29 = vector.broadcast %28 : vector<16x1xf32> to vector<16x16xf32>
    %30 = arith.mulf %25, %29 : vector<16x16xf32>
    %cst_14 = arith.constant dense<0.000000e+00> : vector<16x32xf32>
    %31 = tpu.matmul %30, %15, %cst_14 {dimension_numbers = #tpu.dot_dimension_numbers<[1], [0], [0], [1], [0, 0, 1, 1], [], []>} : vector<16x16xf32>, vector<16x32xf32>, vector<16x32xf32> -> vector<16x32xf32>
    %32 = vector.extract_strided_slice %11 {offsets = [0, 32], sizes = [16, 32], strides = [1, 1]} : vector<16x384xf32> to vector<16x32xf32>
    %33 = vector.extract_strided_slice %11 {offsets = [0, 160], sizes = [16, 32], strides = [1, 1]} : vector<16x384xf32> to vector<16x32xf32>
    %34 = vector.extract_strided_slice %11 {offsets = [0, 288], sizes = [16, 32], strides = [1, 1]} : vector<16x384xf32> to vector<16x32xf32>
    %cst_15 = arith.constant dense<0.000000e+00> : vector<16x16xf32>
    %35 = tpu.matmul %32, %33, %cst_15 {dimension_numbers = #tpu.dot_dimension_numbers<[1], [1], [0], [0], [0, 0, 1, 0], [], []>} : vector<16x32xf32>, vector<16x32xf32>, vector<16x16xf32> -> vector<16x16xf32>
    %cst_16 = arith.constant 0.176776692 : f32
    %36 = vector.broadcast %cst_16 : f32 to vector<16x16xf32>
    %37 = arith.mulf %35, %36 : vector<16x16xf32>
    %38 = vector.broadcast %12 : vector<1x16xf32> to vector<16x16xf32>
    %39 = arith.addf %37, %38 : vector<16x16xf32>
    %cst_17 = arith.constant dense<0xFF800000> : vector<16xf32>
    %40 = vector.multi_reduction <maximumf>, %39, %cst_17 [1] : vector<16x16xf32> to vector<16xf32>
    %41 = vector.shape_cast %40 : vector<16xf32> to vector<16x1xf32>
    %42 = vector.broadcast %41 : vector<16x1xf32> to vector<16x16xf32>
    %43 = arith.subf %39, %42 : vector<16x16xf32>
    %44 = math.exp %43 : vector<16x16xf32>
    %cst_18 = arith.constant dense<0.000000e+00> : vector<16xf32>
    %45 = vector.multi_reduction <add>, %44, %cst_18 [1] : vector<16x16xf32> to vector<16xf32>
    %46 = vector.shape_cast %45 : vector<16xf32> to vector<16x1xf32>
    %47 = tpu.reciprocal %46 {approx = true} : vector<16x1xf32> -> vector<16x1xf32>
    %48 = vector.broadcast %47 : vector<16x1xf32> to vector<16x16xf32>
    %49 = arith.mulf %44, %48 : vector<16x16xf32>
    %cst_19 = arith.constant dense<0.000000e+00> : vector<16x32xf32>
    %50 = tpu.matmul %49, %34, %cst_19 {dimension_numbers = #tpu.dot_dimension_numbers<[1], [0], [0], [1], [0, 0, 1, 1], [], []>} : vector<16x16xf32>, vector<16x32xf32>, vector<16x32xf32> -> vector<16x32xf32>
    %51 = vector.extract_strided_slice %11 {offsets = [0, 64], sizes = [16, 32], strides = [1, 1]} : vector<16x384xf32> to vector<16x32xf32>
    %52 = vector.extract_strided_slice %11 {offsets = [0, 192], sizes = [16, 32], strides = [1, 1]} : vector<16x384xf32> to vector<16x32xf32>
    %53 = vector.extract_strided_slice %11 {offsets = [0, 320], sizes = [16, 32], strides = [1, 1]} : vector<16x384xf32> to vector<16x32xf32>
    %cst_20 = arith.constant dense<0.000000e+00> : vector<16x16xf32>
    %54 = tpu.matmul %51, %52, %cst_20 {dimension_numbers = #tpu.dot_dimension_numbers<[1], [1], [0], [0], [0, 0, 1, 0], [], []>} : vector<16x32xf32>, vector<16x32xf32>, vector<16x16xf32> -> vector<16x16xf32>
    %cst_21 = arith.constant 0.176776692 : f32
    %55 = vector.broadcast %cst_21 : f32 to vector<16x16xf32>
    %56 = arith.mulf %54, %55 : vector<16x16xf32>
    %57 = vector.broadcast %12 : vector<1x16xf32> to vector<16x16xf32>
    %58 = arith.addf %56, %57 : vector<16x16xf32>
    %cst_22 = arith.constant dense<0xFF800000> : vector<16xf32>
    %59 = vector.multi_reduction <maximumf>, %58, %cst_22 [1] : vector<16x16xf32> to vector<16xf32>
    %60 = vector.shape_cast %59 : vector<16xf32> to vector<16x1xf32>
    %61 = vector.broadcast %60 : vector<16x1xf32> to vector<16x16xf32>
    %62 = arith.subf %58, %61 : vector<16x16xf32>
    %63 = math.exp %62 : vector<16x16xf32>
    %cst_23 = arith.constant dense<0.000000e+00> : vector<16xf32>
    %64 = vector.multi_reduction <add>, %63, %cst_23 [1] : vector<16x16xf32> to vector<16xf32>
    %65 = vector.shape_cast %64 : vector<16xf32> to vector<16x1xf32>
    %66 = tpu.reciprocal %65 {approx = true} : vector<16x1xf32> -> vector<16x1xf32>
    %67 = vector.broadcast %66 : vector<16x1xf32> to vector<16x16xf32>
    %68 = arith.mulf %63, %67 : vector<16x16xf32>
    %cst_24 = arith.constant dense<0.000000e+00> : vector<16x32xf32>
    %69 = tpu.matmul %68, %53, %cst_24 {dimension_numbers = #tpu.dot_dimension_numbers<[1], [0], [0], [1], [0, 0, 1, 1], [], []>} : vector<16x16xf32>, vector<16x32xf32>, vector<16x32xf32> -> vector<16x32xf32>
    %70 = vector.extract_strided_slice %11 {offsets = [0, 96], sizes = [16, 32], strides = [1, 1]} : vector<16x384xf32> to vector<16x32xf32>
    %71 = vector.extract_strided_slice %11 {offsets = [0, 224], sizes = [16, 32], strides = [1, 1]} : vector<16x384xf32> to vector<16x32xf32>
    %72 = vector.extract_strided_slice %11 {offsets = [0, 352], sizes = [16, 32], strides = [1, 1]} : vector<16x384xf32> to vector<16x32xf32>
    %cst_25 = arith.constant dense<0.000000e+00> : vector<16x16xf32>
    %73 = tpu.matmul %70, %71, %cst_25 {dimension_numbers = #tpu.dot_dimension_numbers<[1], [1], [0], [0], [0, 0, 1, 0], [], []>} : vector<16x32xf32>, vector<16x32xf32>, vector<16x16xf32> -> vector<16x16xf32>
    %cst_26 = arith.constant 0.176776692 : f32
    %74 = vector.broadcast %cst_26 : f32 to vector<16x16xf32>
    %75 = arith.mulf %73, %74 : vector<16x16xf32>
    %76 = vector.broadcast %12 : vector<1x16xf32> to vector<16x16xf32>
    %77 = arith.addf %75, %76 : vector<16x16xf32>
    %cst_27 = arith.constant dense<0xFF800000> : vector<16xf32>
    %78 = vector.multi_reduction <maximumf>, %77, %cst_27 [1] : vector<16x16xf32> to vector<16xf32>
    %79 = vector.shape_cast %78 : vector<16xf32> to vector<16x1xf32>
    %80 = vector.broadcast %79 : vector<16x1xf32> to vector<16x16xf32>
    %81 = arith.subf %77, %80 : vector<16x16xf32>
    %82 = math.exp %81 : vector<16x16xf32>
    %cst_28 = arith.constant dense<0.000000e+00> : vector<16xf32>
    %83 = vector.multi_reduction <add>, %82, %cst_28 [1] : vector<16x16xf32> to vector<16xf32>
    %84 = vector.shape_cast %83 : vector<16xf32> to vector<16x1xf32>
    %85 = tpu.reciprocal %84 {approx = true} : vector<16x1xf32> -> vector<16x1xf32>
    %86 = vector.broadcast %85 : vector<16x1xf32> to vector<16x16xf32>
    %87 = arith.mulf %82, %86 : vector<16x16xf32>
    %cst_29 = arith.constant dense<0.000000e+00> : vector<16x32xf32>
    %88 = tpu.matmul %87, %72, %cst_29 {dimension_numbers = #tpu.dot_dimension_numbers<[1], [0], [0], [1], [0, 0, 1, 1], [], []>} : vector<16x16xf32>, vector<16x32xf32>, vector<16x32xf32> -> vector<16x32xf32>
    %89 = tpu.concatenate %31, %50, %69, %88 in 1 : vector<16x32xf32>, vector<16x32xf32>, vector<16x32xf32>, vector<16x32xf32> -> vector<16x128xf32>
    %90 = arith.truncf %89 : vector<16x128xf32> to vector<16x128xbf16>
    %c0_30 = arith.constant 0 : index
    %c0_31 = arith.constant 0 : index
    %c0_32 = arith.constant 0 : index
    %91 = vector.load %arg7[%c0_30, %c0_31, %c0_32] : memref<1x128x128xbf16, #tpu.memory_space<vmem>>, vector<1x128x128xbf16>
    %92 = vector.shape_cast %91 : vector<1x128x128xbf16> to vector<128x128xbf16>
    %cst_33 = arith.constant dense<0.000000e+00> : vector<16x128xf32>
    %93 = tpu.matmul %90, %92, %cst_33 {dimension_numbers = #tpu.dot_dimension_numbers<[1], [0], [0], [1], [0, 0, 1, 1], [], []>} : vector<16x128xbf16>, vector<128x128xbf16>, vector<16x128xf32> -> vector<16x128xf32>
    %c0_34 = arith.constant 0 : index
    %c0_35 = arith.constant 0 : index
    %c0_36 = arith.constant 0 : index
    %94 = vector.load %arg8[%c0_34, %c0_35, %c0_36] : memref<1x1x128xf32, #tpu.memory_space<vmem>>, vector<1x1x128xf32>
    %95 = vector.shape_cast %94 : vector<1x1x128xf32> to vector<1x128xf32>
    %96 = vector.broadcast %95 : vector<1x128xf32> to vector<16x128xf32>
    %97 = arith.addf %93, %96 : vector<16x128xf32>
    %98 = arith.addf %3, %97 : vector<16x128xf32>
    %cst_37 = arith.constant dense<0.000000e+00> : vector<16xf32>
    %99 = vector.multi_reduction <add>, %98, %cst_37 [1] : vector<16x128xf32> to vector<16xf32>
    %100 = vector.shape_cast %99 : vector<16xf32> to vector<16x1xf32>
    %cst_38 = arith.constant 1.280000e+02 : f32
    %101 = vector.broadcast %cst_38 : f32 to vector<16x1xf32>
    %102 = arith.divf %100, %101 : vector<16x1xf32>
    %103 = vector.broadcast %102 : vector<16x1xf32> to vector<16x128xf32>
    %104 = arith.subf %98, %103 : vector<16x128xf32>
    %105 = arith.mulf %104, %104 : vector<16x128xf32>
    %cst_39 = arith.constant dense<0.000000e+00> : vector<16xf32>
    %106 = vector.multi_reduction <add>, %105, %cst_39 [1] : vector<16x128xf32> to vector<16xf32>
    %107 = vector.shape_cast %106 : vector<16xf32> to vector<16x1xf32>
    %cst_40 = arith.constant 1.280000e+02 : f32
    %108 = vector.broadcast %cst_40 : f32 to vector<16x1xf32>
    %109 = arith.divf %107, %108 : vector<16x1xf32>
    %110 = vector.broadcast %102 : vector<16x1xf32> to vector<16x128xf32>
    %111 = arith.subf %98, %110 : vector<16x128xf32>
    %cst_41 = arith.constant 9.99999974E-6 : f32
    %112 = vector.broadcast %cst_41 : f32 to vector<16x1xf32>
    %113 = arith.addf %109, %112 : vector<16x1xf32>
    %114 = math.rsqrt %113 : vector<16x1xf32>
    %115 = vector.broadcast %114 : vector<16x1xf32> to vector<16x128xf32>
    %116 = arith.mulf %111, %115 : vector<16x128xf32>
    %c0_42 = arith.constant 0 : index
    %c0_43 = arith.constant 0 : index
    %c0_44 = arith.constant 0 : index
    %117 = vector.load %arg9[%c0_42, %c0_43, %c0_44] : memref<1x1x128xf32, #tpu.memory_space<vmem>>, vector<1x1x128xf32>
    %118 = vector.shape_cast %117 : vector<1x1x128xf32> to vector<1x128xf32>
    %119 = vector.broadcast %118 : vector<1x128xf32> to vector<16x128xf32>
    %120 = arith.mulf %116, %119 : vector<16x128xf32>
    %c0_45 = arith.constant 0 : index
    %c0_46 = arith.constant 0 : index
    %c0_47 = arith.constant 0 : index
    %121 = vector.load %arg10[%c0_45, %c0_46, %c0_47] : memref<1x1x128xf32, #tpu.memory_space<vmem>>, vector<1x1x128xf32>
    %122 = vector.shape_cast %121 : vector<1x1x128xf32> to vector<1x128xf32>
    %123 = vector.broadcast %122 : vector<1x128xf32> to vector<16x128xf32>
    %124 = arith.addf %120, %123 : vector<16x128xf32>
    %125 = arith.truncf %124 : vector<16x128xf32> to vector<16x128xbf16>
    %c0_48 = arith.constant 0 : index
    %c0_49 = arith.constant 0 : index
    %c0_50 = arith.constant 0 : index
    %126 = vector.load %arg11[%c0_48, %c0_49, %c0_50] : memref<1x128x256xbf16, #tpu.memory_space<vmem>>, vector<1x128x256xbf16>
    %127 = vector.shape_cast %126 : vector<1x128x256xbf16> to vector<128x256xbf16>
    %cst_51 = arith.constant dense<0.000000e+00> : vector<16x256xf32>
    %128 = tpu.matmul %125, %127, %cst_51 {dimension_numbers = #tpu.dot_dimension_numbers<[1], [0], [0], [1], [0, 0, 1, 1], [], []>} : vector<16x128xbf16>, vector<128x256xbf16>, vector<16x256xf32> -> vector<16x256xf32>
    %c0_52 = arith.constant 0 : index
    %c0_53 = arith.constant 0 : index
    %c0_54 = arith.constant 0 : index
    %129 = vector.load %arg12[%c0_52, %c0_53, %c0_54] : memref<1x1x256xf32, #tpu.memory_space<vmem>>, vector<1x1x256xf32>
    %130 = vector.shape_cast %129 : vector<1x1x256xf32> to vector<1x256xf32>
    %131 = vector.broadcast %130 : vector<1x256xf32> to vector<16x256xf32>
    %132 = arith.addf %128, %131 : vector<16x256xf32>
    %cst_55 = arith.constant 0.000000e+00 : f32
    %133 = vector.broadcast %cst_55 : f32 to vector<16x256xf32>
    %134 = arith.maximumf %132, %133 : vector<16x256xf32>
    %135 = arith.truncf %134 : vector<16x256xf32> to vector<16x256xbf16>
    %c0_56 = arith.constant 0 : index
    %c0_57 = arith.constant 0 : index
    %c0_58 = arith.constant 0 : index
    %136 = vector.load %arg13[%c0_56, %c0_57, %c0_58] : memref<1x256x128xbf16, #tpu.memory_space<vmem>>, vector<1x256x128xbf16>
    %137 = vector.shape_cast %136 : vector<1x256x128xbf16> to vector<256x128xbf16>
    %cst_59 = arith.constant dense<0.000000e+00> : vector<16x128xf32>
    %138 = tpu.matmul %135, %137, %cst_59 {dimension_numbers = #tpu.dot_dimension_numbers<[1], [0], [0], [1], [0, 0, 1, 1], [], []>} : vector<16x256xbf16>, vector<256x128xbf16>, vector<16x128xf32> -> vector<16x128xf32>
    %c0_60 = arith.constant 0 : index
    %c0_61 = arith.constant 0 : index
    %c0_62 = arith.constant 0 : index
    %139 = vector.load %arg14[%c0_60, %c0_61, %c0_62] : memref<1x1x128xf32, #tpu.memory_space<vmem>>, vector<1x1x128xf32>
    %140 = vector.shape_cast %139 : vector<1x1x128xf32> to vector<1x128xf32>
    %141 = vector.broadcast %140 : vector<1x128xf32> to vector<16x128xf32>
    %142 = arith.addf %138, %141 : vector<16x128xf32>
    %143 = arith.addf %124, %142 : vector<16x128xf32>
    %cst_63 = arith.constant dense<0.000000e+00> : vector<16xf32>
    %144 = vector.multi_reduction <add>, %143, %cst_63 [1] : vector<16x128xf32> to vector<16xf32>
    %145 = vector.shape_cast %144 : vector<16xf32> to vector<16x1xf32>
    %cst_64 = arith.constant 1.280000e+02 : f32
    %146 = vector.broadcast %cst_64 : f32 to vector<16x1xf32>
    %147 = arith.divf %145, %146 : vector<16x1xf32>
    %148 = vector.broadcast %147 : vector<16x1xf32> to vector<16x128xf32>
    %149 = arith.subf %143, %148 : vector<16x128xf32>
    %150 = arith.mulf %149, %149 : vector<16x128xf32>
    %cst_65 = arith.constant dense<0.000000e+00> : vector<16xf32>
    %151 = vector.multi_reduction <add>, %150, %cst_65 [1] : vector<16x128xf32> to vector<16xf32>
    %152 = vector.shape_cast %151 : vector<16xf32> to vector<16x1xf32>
    %cst_66 = arith.constant 1.280000e+02 : f32
    %153 = vector.broadcast %cst_66 : f32 to vector<16x1xf32>
    %154 = arith.divf %152, %153 : vector<16x1xf32>
    %155 = vector.broadcast %147 : vector<16x1xf32> to vector<16x128xf32>
    %156 = arith.subf %143, %155 : vector<16x128xf32>
    %cst_67 = arith.constant 9.99999974E-6 : f32
    %157 = vector.broadcast %cst_67 : f32 to vector<16x1xf32>
    %158 = arith.addf %154, %157 : vector<16x1xf32>
    %159 = math.rsqrt %158 : vector<16x1xf32>
    %160 = vector.broadcast %159 : vector<16x1xf32> to vector<16x128xf32>
    %161 = arith.mulf %156, %160 : vector<16x128xf32>
    %c0_68 = arith.constant 0 : index
    %c0_69 = arith.constant 0 : index
    %c0_70 = arith.constant 0 : index
    %162 = vector.load %arg15[%c0_68, %c0_69, %c0_70] : memref<1x1x128xf32, #tpu.memory_space<vmem>>, vector<1x1x128xf32>
    %163 = vector.shape_cast %162 : vector<1x1x128xf32> to vector<1x128xf32>
    %164 = vector.broadcast %163 : vector<1x128xf32> to vector<16x128xf32>
    %165 = arith.mulf %161, %164 : vector<16x128xf32>
    %c0_71 = arith.constant 0 : index
    %c0_72 = arith.constant 0 : index
    %c0_73 = arith.constant 0 : index
    %166 = vector.load %arg16[%c0_71, %c0_72, %c0_73] : memref<1x1x128xf32, #tpu.memory_space<vmem>>, vector<1x1x128xf32>
    %167 = vector.shape_cast %166 : vector<1x1x128xf32> to vector<1x128xf32>
    %168 = vector.broadcast %167 : vector<1x128xf32> to vector<16x128xf32>
    %169 = arith.addf %165, %168 : vector<16x128xf32>
    %c0_74 = arith.constant 0 : index
    %c0_75 = arith.constant 0 : index
    %170 = vector.load %arg17[%c0_74, %c0_75] : memref<16x128xf32, #tpu.memory_space<vmem>>, vector<16x128xf32>
    tpu.vector_store %arg17[%c0_74, %c0_75], %169 {strides = array<i32>} : memref<16x128xf32, #tpu.memory_space<vmem>>, vector<16x128xf32>,
    return
  }
  func.func @transform_0(%arg0: i32) -> (i32, i32) {
    %c0_i32 = arith.constant 0 : i32
    %c0_i32_0 = arith.constant 0 : i32
    %c0_i32_1 = arith.constant 0 : i32
    return %c0_i32, %c0_i32_0 : i32, i32
  }
  func.func @transform_1(%arg0: i32) -> (i32, i32) {
    %c0_i32 = arith.constant 0 : i32
    %c0_i32_0 = arith.constant 0 : i32
    %c0_i32_1 = arith.constant 0 : i32
    return %c0_i32, %c0_i32_0 : i32, i32
  }
  func.func @transform_2(%arg0: i32) -> (i32, i32) {
    %c0_i32 = arith.constant 0 : i32
    %c0_i32_0 = arith.constant 0 : i32
    %c0_i32_1 = arith.constant 0 : i32
    return %c0_i32, %c0_i32_0 : i32, i32
  }
  func.func @transform_3(%arg0: i32) -> (i32, i32) {
    %c0_i32 = arith.constant 0 : i32
    %c0_i32_0 = arith.constant 0 : i32
    %c0_i32_1 = arith.constant 0 : i32
    return %c0_i32, %c0_i32_0 : i32, i32
  }
  func.func @transform_4(%arg0: i32) -> (i32, i32, i32) {
    %c0_i32 = arith.constant 0 : i32
    %c0_i32_0 = arith.constant 0 : i32
    %c0_i32_1 = arith.constant 0 : i32
    return %arg0, %c0_i32, %c0_i32_0 : i32, i32, i32
  }
  func.func @transform_5(%arg0: i32) -> (i32, i32, i32) {
    %c0_i32 = arith.constant 0 : i32
    %c0_i32_0 = arith.constant 0 : i32
    %c0_i32_1 = arith.constant 0 : i32
    return %arg0, %c0_i32, %c0_i32_0 : i32, i32, i32
  }
  func.func @transform_6(%arg0: i32) -> (i32, i32, i32) {
    %c0_i32 = arith.constant 0 : i32
    %c0_i32_0 = arith.constant 0 : i32
    %c0_i32_1 = arith.constant 0 : i32
    return %arg0, %c0_i32, %c0_i32_0 : i32, i32, i32
  }
  func.func @transform_7(%arg0: i32) -> (i32, i32, i32) {
    %c0_i32 = arith.constant 0 : i32
    %c0_i32_0 = arith.constant 0 : i32
    %c0_i32_1 = arith.constant 0 : i32
    return %arg0, %c0_i32, %c0_i32_0 : i32, i32, i32
  }
  func.func @transform_8(%arg0: i32) -> (i32, i32, i32) {
    %c0_i32 = arith.constant 0 : i32
    %c0_i32_0 = arith.constant 0 : i32
    %c0_i32_1 = arith.constant 0 : i32
    return %arg0, %c0_i32, %c0_i32_0 : i32, i32, i32
  }
  func.func @transform_9(%arg0: i32) -> (i32, i32, i32) {
    %c0_i32 = arith.constant 0 : i32
    %c0_i32_0 = arith.constant 0 : i32
    %c0_i32_1 = arith.constant 0 : i32
    return %arg0, %c0_i32, %c0_i32_0 : i32, i32, i32
  }
  func.func @transform_10(%arg0: i32) -> (i32, i32, i32) {
    %c0_i32 = arith.constant 0 : i32
    %c0_i32_0 = arith.constant 0 : i32
    %c0_i32_1 = arith.constant 0 : i32
    return %arg0, %c0_i32, %c0_i32_0 : i32, i32, i32
  }
  func.func @transform_11(%arg0: i32) -> (i32, i32, i32) {
    %c0_i32 = arith.constant 0 : i32
    %c0_i32_0 = arith.constant 0 : i32
    %c0_i32_1 = arith.constant 0 : i32
    return %arg0, %c0_i32, %c0_i32_0 : i32, i32, i32
  }
  func.func @transform_12(%arg0: i32) -> (i32, i32, i32) {
    %c0_i32 = arith.constant 0 : i32
    %c0_i32_0 = arith.constant 0 : i32
    %c0_i32_1 = arith.constant 0 : i32
    return %arg0, %c0_i32, %c0_i32_0 : i32, i32, i32
  }
  func.func @transform_13(%arg0: i32) -> (i32, i32, i32) {
    %c0_i32 = arith.constant 0 : i32
    %c0_i32_0 = arith.constant 0 : i32
    %c0_i32_1 = arith.constant 0 : i32
    return %arg0, %c0_i32, %c0_i32_0 : i32, i32, i32
  }
  func.func @transform_14(%arg0: i32) -> (i32, i32, i32) {
    %c0_i32 = arith.constant 0 : i32
    %c0_i32_0 = arith.constant 0 : i32
    %c0_i32_1 = arith.constant 0 : i32
    return %arg0, %c0_i32, %c0_i32_0 : i32, i32, i32
  }
  func.func @transform_15(%arg0: i32) -> (i32, i32, i32) {
    %c0_i32 = arith.constant 0 : i32
    %c0_i32_0 = arith.constant 0 : i32
    %c0_i32_1 = arith.constant 0 : i32
    return %arg0, %c0_i32, %c0_i32_0 : i32, i32, i32
  }
  func.func @transform_16(%arg0: i32) -> (i32, i32) {
    %c0_i32 = arith.constant 0 : i32
    %c0_i32_0 = arith.constant 0 : i32
    %c0_i32_1 = arith.constant 0 : i32
    return %c0_i32, %c0_i32_0 : i32, i32
  }
}

</mosaic_0001>

<bundles_post_ra>
// kernel: encoder_forward.1
= control target key start
LH: loop header
LB: loop body
LE: loop exit
PB: predicated region body
PF: predicated region fallthrough
CT: control target
= control target key end

     0   :  { %s3996_s0 = inlined_call_operand.vmem [shape: s32[16,1], index: 0, kind: input, shape index: {}]   ;;  %s3997_s1 = inlined_call_operand.hbm [shape: f32[32,128], index: 1, kind: input, shape index: {}]   ;;  %s3998_s2 = inlined_call_operand.vmem [shape: f32[16,128], index: 2, kind: input, shape index: {}]   ;;  %s3999_s3 = inlined_call_operand.vmem [shape: f32[1,16], index: 3, kind: input, shape index: {}]   ;;  %s4000_s4 = inlined_call_operand.hbm [shape: bf16[2,128,384], index: 4, kind: input, shape index: {}]   ;;  %s4001_s5 = inlined_call_operand.vmem [shape: f32[2,1,384], index: 5, kind: input, shape index: {}]   ;;  %s4002_s6 = inlined_call_operand.hbm [shape: bf16[2,128,128], index: 6, kind: input, shape index: {}]   ;;  %s4003_s7 = inlined_call_operand.vmem [shape: f32[2,1,128], index: 7, kind: input, shape index: {}]   ;;  %s4004_s8 = inlined_call_operand.hbm [shape: f32[2,1,128], index: 8, kind: input, shape index: {}]   ;;  %s4005_s9 = inlined_call_operand.hbm [shape: f32[2,1,128], index: 9, kind: input, shape index: {}]   ;;  %s4006_s10 = inlined_call_operand.hbm [shape: bf16[2,128,256], index: 10, kind: input, shape index: {}]   ;;  %s4007_s11 = inlined_call_operand.hbm [shape: f32[2,1,256], index: 11, kind: input, shape index: {}]   ;;  %s4008_s12 = inlined_call_operand.hbm [shape: bf16[2,256,128], index: 12, kind: input, shape index: {}]   ;;  %s4009_s13 = inlined_call_operand.hbm [shape: f32[2,1,128], index: 13, kind: input, shape index: {}]   ;;  %s4010_s14 = inlined_call_operand.vmem [shape: f32[2,1,128], index: 14, kind: input, shape index: {}]   ;;  %s4011_s15 = inlined_call_operand.hbm [shape: f32[2,1,128], index: 15, kind: input, shape index: {}]   ;;  %s4012_s16 = inlined_call_operand.hbm [shape: f32[16,128], index: 16, kind: output, shape index: {}]  }
   0x1   :  { %4023 = sst [smem:[#allocation30_spill]] %s3996_s0 }
   0x2   :  { %4024 = sst [smem:[#allocation31_spill]] %s3997_s1 }
   0x3   :  { %4025 = sst [smem:[#allocation32_spill]] %s3998_s2 }
   0x4   :  { %4026 = sst [smem:[#allocation33_spill]] %s3999_s3 }
   0x5   :  { %4027 = sst [smem:[#allocation34_spill]] %s4000_s4 }
   0x6   :  { %4028 = sst [smem:[#allocation35_spill]] %s4001_s5 }
   0x7   :  { %4029 = sst [smem:[#allocation36_spill]] %s4003_s7 }
   0x8   :  { %4030 = sst [smem:[#allocation37_spill]] %s4004_s8 }
   0x9   :  { %4031 = sst [smem:[#allocation38_spill]] %s4006_s10 }
   0xa   :  { %4032 = sst [smem:[#allocation39_spill]] %s4010_s14 }
   0xb   :  { %4033 = sst [smem:[#allocation40_spill]] %s4011_s15 }
   0xc   :  { %4034 = sst [smem:[#allocation41_spill]] %s4012_s16 }
   0xd   :  { %21 = vsyncpa [#allocation3], 0 }
   0xe   :  { %22 = vsyncpa [#allocation6], 0 }
   0xf   :  { %24 = vsyncpa [#allocation6 + $0x1], 0 }
  0x10   :  { %25 = vsyncpa [#allocation9], 0 }
  0x11   :  { %27 = vsyncpa [#allocation9 + $0x1], 0 }
  0x12   :  { %28 = vsyncpa [#allocation12], 0 }
  0x13   :  { %30 = vsyncpa [#allocation12 + $0x1], 0 }
  0x14   :  { %31 = vsyncpa [#allocation15], 0 }
  0x15   :  { %33 = vsyncpa [#allocation15 + $0x1], 0 }
  0x16   :  { %34 = vsyncpa [#allocation18], 0 }
  0x17   :  { %36 = vsyncpa [#allocation18 + $0x1], 0 }
  0x18   :  { %37 = vsyncpa [#allocation4], 0  ;;  %s3408_s21 = smov 0   ;;  %s3410_s22 = smov 0  }
  0x19   :  { %s3412_s23 = smov 0   ;;  %s3414_s24 = smov 0  }
  0x1a LB: > { %4035 = sst [smem:[#allocation27_spill]] %s3301_s23  ;;  %s3429_s25 = sadd.s32 1, %s3305_s24   ;;  %s3305_s24 = sphi %s3414_s24, %s4066_s24   ;;  %s3301_s23 = sphi %s3412_s23, %s4068_s23   ;;  %s3297_s22 = sphi %s3410_s22, %s4070_s22   ;;  %s3293_s21 = sphi %s3408_s21, %s4069_s21  }
  0x1b   : > { %4036 = sst [smem:[#allocation28_spill]] %s3429_s25  ;;  %s134_s26 = sadd.s32 1, %s3301_s23 }
  0x1c   : > { %s131_s27 = ssub.s32 %s3305_s24, %s3429_s25  ;;  %p141_p0 = scmp.ne.s32.totalorder %s3301_s23, %s3297_s22 }
  0x1d   : > { %p132_p1 = scmp.eq.s32.totalorder %s131_s27, 0  ;;  %p142_p2 = scmp.eq.s32.totalorder %s3305_s24, 0 }
  0x1e   : > { %p2787_p3 = scmp.lt.s32.totalorder %s3305_s24, 2  ;;  %s3442_s29 = sand.u32 1, %s3305_s24  }
  0x1f   : > { %s3439_s28 = scalar_select %p132_p1, %s3301_s23, %s134_s26  }
  0x20   : > { %p143_p4 = por %p142_p2, %p141_p0  ;;  %s3445_s30 = sand.u32 1, %s3301_s23  }
  0x21   : > { %4037 = sst [smem:[#allocation29_spill]] %s3439_s28  ;;  %s2724_s0 = smul.u32 192, %s3445_s30 }
  0x22   : > { %p3448_p5 = pnand %p2787_p3, %p143_p4  ;;  %s2725_s18 = smul.u32 192, %s3305_s24 }
  0x23   : > { %s4039_s4 = sld [smem:[#allocation34_spill]]  ;;  %s505_s26 = scalar_lea.vmem [#allocation5], %s2724_s0 }
  0x24   : > { %s513_s28 = sshll.u32 %s505_s26, 4  ;;  %p3459_p7 = pneg %p3448_p5  ;;  %s514_s28 = int_to_ptr.vmem [resolvable:$true] %s513_s28 }
  0x29   : > { %s510_s27 = scalar_lea.hbm %s4039_s4, %s2725_s18  ;;  %s2926_s19 = scalar_lea.hbm %s4039_s4, 384 }
  0x2a   : > { %s511_s25 = sshll.u32 %s510_s27, 4  ;;  %s512_s25 = int_to_ptr.hbm [resolvable:$true] %s511_s25 }
  0x2b   : > { %s2919_s23 = sshra.s32 %s512_s25, 4  ;;  %s2920_s23 = int_to_ptr.hbm [resolvable:$true] %s2919_s23 }
  0x2c   : > { %s2921_s3 = scalar_lea.hbm %s2920_s23, 192  ;;  %p2927_p10 = scmp.lt.s32.totalorder %s2920_s23, %s4039_s4 }
  0x2d   : > { %p2922_p6 = scmp.ne.s32.totalorder %s2920_s23, %s2921_s3  ;;  %p2928_p11 = scmp.lt.s32.totalorder %s2926_s19, %s2921_s3 }
  0x2f   : > { %p2924_p8 = pnand %p3459_p7, %p2922_p6  ;;  %p2929_p12 = por %p2928_p11, %p2927_p10 }
  0x31   : > { %p2925_p9 = pneg %p2924_p8 }
  0x33   : > { %p2930_p13 = pnand %p2929_p12, %p2925_p9 }
  0x35   : > { %2933 = shalt.err (!%p2930_p13)
}
  0x36   : > { %s3307_s26 = smov 192   ;;  %s3308_s16 = smov 12  }
  0x37   : > { %s4041_s5 = scalar_lea.sflag [#allocation6], %s3442_s29  ;;  %s4042_s8 = sld [smem:[#allocation37_spill]] }
  0x38   : > { %2761 = dma.hbm_to_vmem [thread:$0]  (!%p3448_p5), %s512_s25, 3072, %s514_s28, %s4041_s5, %s3307_s26, %s3307_s26, %s3308_s16  }
  0x39   : > { %s561_s23 = scalar_lea.vmem [#allocation8], %s3445_s30  ;;  %s4019_s27 = scalar_lea.sflag [#allocation9], %s3442_s29 }
  0x3a   : > { %s568_s3 = sshll.u32 %s561_s23, 4  ;;  %s569_s3 = int_to_ptr.vmem [resolvable:$true] %s568_s3 }
  0x3d   : > { %s564_s20 = scalar_lea.hbm %s4042_s8, %s3305_s24  ;;  %s2956_s5 = scalar_lea.hbm %s4042_s8, 2 }
  0x3e   : > { %s566_s19 = sshll.u32 %s564_s20, 4  ;;  %s567_s19 = int_to_ptr.hbm [resolvable:$true] %s566_s19 }
  0x3f   : > { %s2949_s4 = sshra.s32 %s567_s19, 4  ;;  %s2950_s4 = int_to_ptr.hbm [resolvable:$true] %s2949_s4 }
  0x40   : > { %s2951_s14 = scalar_lea.hbm %s2950_s4, 1  ;;  %p2957_p3 = scmp.lt.s32.totalorder %s2950_s4, %s4042_s8 }
  0x41   : > { %p2952_p0 = scmp.ne.s32.totalorder %s2950_s4, %s2951_s14  ;;  %p2958_p4 = scmp.lt.s32.totalorder %s2956_s5, %s2951_s14 }
  0x43   : > { %p2954_p1 = pnand %p2952_p0, %p3459_p7  ;;  %p2959_p6 = por %p2958_p4, %p2957_p3 }
  0x45   : > { %p2955_p2 = pneg %p2954_p1 }
  0x47   : > { %p2960_p8 = pnand %p2959_p6, %p2955_p2 }
  0x49   : > { %2963 = shalt.err (!%p2960_p8)
}
  0x4a   : > { %2767 = dma.hbm_to_vmem [thread:$0]  (!%p3448_p5), %s567_s19, 16, %s569_s3, %s4019_s27  }
  0x4b   : > { %s2350_s28 = sshll.u32 %s3445_s30, 7  ;;  %s2654_s7 = sshll.u32 %s3305_s24, 7 }
  0x4c   : > { %s4043_s10 = sld [smem:[#allocation38_spill]]  ;;  %s596_s14 = scalar_lea.vmem [#allocation11], %s2350_s28 }
  0x4d   : > { %s604_s0 = sshll.u32 %s596_s14, 4  ;;  %s4021_s20 = scalar_lea.sflag [#allocation12], %s3442_s29  ;;  %s605_s0 = int_to_ptr.vmem [resolvable:$true] %s604_s0 }
  0x52   : > { %s601_s18 = scalar_lea.hbm %s4043_s10, %s2654_s7  ;;  %s2986_s16 = scalar_lea.hbm %s4043_s10, 256 }
  0x53   : > { %s602_s4 = sshll.u32 %s601_s18, 4  ;;  %s603_s4 = int_to_ptr.hbm [resolvable:$true] %s602_s4 }
  0x54   : > { %s2979_s23 = sshra.s32 %s603_s4, 4  ;;  %s2980_s23 = int_to_ptr.hbm [resolvable:$true] %s2979_s23 }
  0x55   : > { %s2981_s5 = scalar_lea.hbm %s2980_s23, 128  ;;  %p2987_p12 = scmp.lt.s32.totalorder %s2980_s23, %s4043_s10 }
  0x56   : > { %p2982_p9 = scmp.ne.s32.totalorder %s2980_s23, %s2981_s5  ;;  %p2988_p13 = scmp.lt.s32.totalorder %s2986_s16, %s2981_s5 }
  0x58   : > { %p2984_p10 = pnand %p2982_p9, %p3459_p7  ;;  %p2989_p0 = por %p2988_p13, %p2987_p12 }
  0x5a   : > { %p2985_p11 = pneg %p2984_p10 }
  0x5c   : > { %p2990_p1 = pnand %p2989_p0, %p2985_p11 }
  0x5e   : > { %2993 = shalt.err (!%p2990_p1)
}
  0x5f   : > { %s3309_s26 = smov 128   ;;  %s3310_s18 = smov 8  }
  0x60   : > { %2773 = dma.hbm_to_vmem [thread:$0]  (!%p3448_p5), %s603_s4, 2048, %s605_s0, %s4021_s20, %s3309_s26, %s3309_s26, %s3310_s18  }
  0x61   : > { %s642_s23 = scalar_lea.hbm %s4008_s12, %s2654_s7  ;;  %s637_s5 = scalar_lea.vmem [#allocation14], %s2350_s28 }
  0x62   : > { %s645_s19 = sshll.u32 %s637_s5, 4  ;;  %s643_s16 = sshll.u32 %s642_s23, 4  ;;  %s646_s19 = int_to_ptr.vmem [resolvable:$true] %s645_s19  ;;  %s644_s16 = int_to_ptr.hbm [resolvable:$true] %s643_s16 }
  0x63   : > { %s4020_s25 = scalar_lea.sflag [#allocation15], %s3442_s29  ;;  %s3009_s15 = sshra.s32 %s644_s16, 4  ;;  %s3010_s15 = int_to_ptr.hbm [resolvable:$true] %s3009_s15 }
  0x64   : > { %s3011_s27 = scalar_lea.hbm %s3010_s15, 128  ;;  %s3016_s4 = scalar_lea.hbm %s4008_s12, 256 }
  0x65   : > { %p3012_p2 = scmp.ne.s32.totalorder %s3010_s15, %s3011_s27  ;;  %p3017_p6 = scmp.lt.s32.totalorder %s3010_s15, %s4008_s12 }
  0x66   : > { %p3018_p8 = scmp.lt.s32.totalorder %s3016_s4, %s3011_s27 }
  0x67   : > { %p3014_p3 = pnand %p3012_p2, %p3459_p7 }
  0x68   : > { %p3019_p9 = por %p3018_p8, %p3017_p6 }
  0x69   : > { %p3015_p4 = pneg %p3014_p3 }
  0x6b   : > { %p3020_p10 = pnand %p3019_p9, %p3015_p4 }
  0x6d   : > { %3023 = shalt.err (!%p3020_p10)
}
  0x6e   : > { %s4022_s28 = smov 64   ;;  %s3312_s7 = smov 4  }
  0x6f   : > { %2779 = dma.hbm_to_vmem [thread:$0]  (!%p3448_p5), %s644_s16, 2048, %s646_s19, %s4020_s25, %s4022_s28, %s4022_s28, %s3312_s7  }
  0x70   : > { %s3534_s8 = sadd.s32 4294967295, %s3305_s24   ;;  %p147_p11 = scmp.ne.s32.totalorder %s3297_s22, %s3293_s21 }
  0x71   : > { %p148_p12 = scmp.eq.s32.totalorder %s3534_s8, 0  ;;  %p2343_p13 = scmp.ge.s32.totalorder %s3305_s24, 1 }
  0x72   : > { %p465_p0 = scmp.lt.s32.totalorder %s3305_s24, 3  ;;  %p2344_p2 = scmp.ne.s32.totalorder %s3534_s8, 0 }
  0x73   : > { %p3543_p1 = por %p148_p12, %p147_p11  ;;  %s4046_s1 = sld [smem:[#allocation31_spill]] }
  0x74   : > { %p3548_p3 = pnand %p2343_p13, %p465_p0  ;;  %s3313_s21 = smov [#allocation2]  }
  0x75   : > { %s481_s19 = sshll.u32 %s3313_s21, 4  ;;  %s2347_s16 = sshll.u32 %s3445_s30, 6  ;;  %s482_s19 = int_to_ptr.vmem [resolvable:$true] %s481_s19 }
  0x76   : > { %p2754_p4 = pneg %p3548_p3  ;;  %s2653_s15 = sshll.u32 %s3305_s24, 6 }
  0x77   : > { %s534_s4 = scalar_lea.vmem [#allocation7], %s2347_s16  ;;  %s539_s20 = scalar_lea.hbm %s4002_s6, %s2653_s15 }
  0x78   : > { %p2755_p6 = pnand %p2754_p4, %p148_p12  ;;  %s542_s0 = sshll.u32 %s534_s4, 4  ;;  %s543_s0 = int_to_ptr.vmem [resolvable:$true] %s542_s0 }
  0x79   : > { %s479_s5 = sshll.u32 %s4046_s1, 4  ;;  %s540_s3 = sshll.u32 %s539_s20, 4  ;;  %s480_s5 = int_to_ptr.hbm [resolvable:$true] %s479_s5  ;;  %s541_s3 = int_to_ptr.hbm [resolvable:$true] %s540_s3 }
  0x7a   : > { %2757 = dma.hbm_to_vmem [thread:$0]  (!%p2755_p6), %s480_s5, 512, %s482_s19, [#allocation3], %s3309_s26, %s3309_s26, %s3310_s18  }
  0x7b   : > { %s3069_s23 = sshra.s32 %s541_s3, 4  ;;  %s3076_s28 = scalar_lea.hbm %s4002_s6, 128  ;;  %s3070_s23 = int_to_ptr.hbm [resolvable:$true] %s3069_s23 }
  0x7c   : > { %s3071_s21 = scalar_lea.hbm %s3070_s23, 64  ;;  %p3077_p11 = scmp.lt.s32.totalorder %s3070_s23, %s4002_s6 }
  0x7d   : > { %p3072_p8 = scmp.ne.s32.totalorder %s3070_s23, %s3071_s21  ;;  %p3078_p13 = scmp.lt.s32.totalorder %s3076_s28, %s3071_s21 }
  0x7f   : > { %p3074_p9 = pnand %p3072_p8, %p3459_p7  ;;  %p3079_p0 = por %p3078_p13, %p3077_p11 }
  0x81   : > { %p3075_p10 = pneg %p3074_p9 }
  0x83   : > { %p3080_p4 = pnand %p3079_p0, %p3075_p10 }
  0x85   : > { %3083 = shalt.err (!%p3080_p4)
}
  0x86   : > { %s4047_s20 = smov 64   ;;  %s4048_s26 = scalar_lea.sflag [#allocation6], %s3442_s29 }
  0x87   : > { %2764 = dma.hbm_to_vmem [thread:$0]  (!%p3448_p5), %s541_s3, 1024, %s543_s0, %s4048_s26, %s4047_s20, %s4047_s20, %s3312_s7  }
  0x88   : > { %s581_s19 = scalar_lea.hbm %s4005_s9, %s3305_s24  ;;  %s578_s28 = scalar_lea.vmem [#allocation10], %s3445_s30 }
  0x89   : > { %s585_s14 = sshll.u32 %s578_s28, 4  ;;  %s583_s23 = sshll.u32 %s581_s19, 4  ;;  %s586_s14 = int_to_ptr.vmem [resolvable:$true] %s585_s14  ;;  %s584_s23 = int_to_ptr.hbm [resolvable:$true] %s583_s23 }
  0x8a   : > { %s2353_s21 = sshll.u32 %s3445_s30, 1  ;;  %s3099_s16 = sshra.s32 %s584_s23, 4  ;;  %s3100_s16 = int_to_ptr.hbm [resolvable:$true] %s3099_s16 }
  0x8b   : > { %s3101_s4 = scalar_lea.hbm %s3100_s16, 1  ;;  %s3106_s7 = scalar_lea.hbm %s4005_s9, 2 }
  0x8c   : > { %p3102_p6 = scmp.ne.s32.totalorder %s3100_s16, %s3101_s4  ;;  %p3107_p10 = scmp.lt.s32.totalorder %s3100_s16, %s4005_s9 }
  0x8d   : > { %p3108_p11 = scmp.lt.s32.totalorder %s3106_s7, %s3101_s4 }
  0x8e   : > { %p3104_p8 = pnand %p3102_p6, %p3459_p7 }
  0x8f   : > { %p3109_p13 = por %p3108_p11, %p3107_p10 }
  0x90   : > { %p3105_p9 = pneg %p3104_p8 }
  0x92   : > { %p3110_p0 = pnand %p3109_p13, %p3105_p9 }
  0x94   : > { %3113 = shalt.err (!%p3110_p0)
}
  0x95   : > { %s4049_s20 = scalar_lea.sflag [#allocation9], %s3442_s29  ;;  %s2354_s26 = sshll.u32 %s3305_s24, 1 }
  0x96   : > { %2770 = dma.hbm_to_vmem [thread:$0]  (!%p3448_p5), %s584_s23, 16, %s586_s14, %s4049_s20  }
  0x97   : > { %s622_s19 = scalar_lea.hbm %s4007_s11, %s2354_s26  ;;  %s618_s28 = scalar_lea.vmem [#allocation13], %s2353_s21 }
  0x98   : > { %s626_s25 = sshll.u32 %s618_s28, 4  ;;  %s624_s15 = sshll.u32 %s622_s19, 4  ;;  %s627_s25 = int_to_ptr.vmem [resolvable:$true] %s626_s25  ;;  %s625_s15 = int_to_ptr.hbm [resolvable:$true] %s624_s15 }
  0x99   : > { %s3129_s16 = sshra.s32 %s625_s15, 4  ;;  %s3136_s14 = scalar_lea.hbm %s4007_s11, 4  ;;  %s3130_s16 = int_to_ptr.hbm [resolvable:$true] %s3129_s16 }
  0x9a   : > { %s3131_s4 = scalar_lea.hbm %s3130_s16, 2  ;;  %p3137_p9 = scmp.lt.s32.totalorder %s3130_s16, %s4007_s11 }
  0x9b   : > { %p3132_p4 = scmp.ne.s32.totalorder %s3130_s16, %s3131_s4  ;;  %p3138_p10 = scmp.lt.s32.totalorder %s3136_s14, %s3131_s4 }
  0x9d   : > { %p3134_p6 = pnand %p3132_p4, %p3459_p7  ;;  %p3139_p11 = por %p3138_p10, %p3137_p9 }
  0x9f   : > { %p3135_p8 = pneg %p3134_p6 }
  0xa1   : > { %p3140_p13 = pnand %p3139_p11, %p3135_p8 }
  0xa3   : > { %3143 = shalt.err (!%p3140_p13)
}
  0xa4   : > { %s4050_s21 = scalar_lea.sflag [#allocation12], %s3442_s29  ;;  %s661_s18 = scalar_lea.hbm %s4009_s13, %s3305_s24 }
  0xa5   : > { %2776 = dma.hbm_to_vmem [thread:$0]  (!%p3448_p5), %s625_s15, 32, %s627_s25, %s4050_s21  }
  0xa6   : > { %s658_s5 = scalar_lea.vmem [#allocation16], %s3445_s30  ;;  %s663_s28 = sshll.u32 %s661_s18, 4  ;;  %s664_s28 = int_to_ptr.hbm [resolvable:$true] %s663_s28 }
  0xa7   : > { %s665_s19 = sshll.u32 %s658_s5, 4  ;;  %s3159_s16 = sshra.s32 %s664_s28, 4  ;;  %s666_s19 = int_to_ptr.vmem [resolvable:$true] %s665_s19  ;;  %s3160_s16 = int_to_ptr.hbm [resolvable:$true] %s3159_s16 }
  0xa8   : > { %s3161_s4 = scalar_lea.hbm %s3160_s16, 1  ;;  %s3166_s25 = scalar_lea.hbm %s4009_s13, 2 }
  0xa9   : > { %p3162_p0 = scmp.ne.s32.totalorder %s3160_s16, %s3161_s4  ;;  %p3167_p8 = scmp.lt.s32.totalorder %s3160_s16, %s4009_s13 }
  0xaa   : > { %p3168_p9 = scmp.lt.s32.totalorder %s3166_s25, %s3161_s4 }
  0xab   : > { %p3164_p4 = pnand %p3162_p0, %p3459_p7 }
  0xac   : > { %p3169_p10 = por %p3168_p9, %p3167_p8 }
  0xad   : > { %p3165_p6 = pneg %p3164_p4 }
  0xaf   : > { %p3170_p11 = pnand %p3169_p10, %p3165_p6 }
  0xb1   : > { %3173 = shalt.err (!%p3170_p11)
}
  0xb2   : > { %s4051_s23 = scalar_lea.sflag [#allocation15], %s3442_s29  ;;  %s4052_s20 = sld [smem:[#allocation40_spill]] }
  0xb3   : > { %2782 = dma.hbm_to_vmem [thread:$0]  (!%p3448_p5), %s664_s28, 16, %s666_s19, %s4051_s23  }
  0xb4   : > { %s681_s5 = scalar_lea.vmem [#allocation17], %s3445_s30  ;;  %s679_s4 = scalar_lea.sflag [#allocation18], %s3445_s30 }
  0xb5   : > { %s688_s16 = sshll.u32 %s681_s5, 4  ;;  %s689_s16 = int_to_ptr.vmem [resolvable:$true] %s688_s16 }
  0xb8   : > { %s684_s26 = scalar_lea.hbm %s4052_s20, %s3305_s24  ;;  %s3196_s19 = scalar_lea.hbm %s4052_s20, 2 }
  0xb9   : > { %s686_s18 = sshll.u32 %s684_s26, 4  ;;  %s687_s18 = int_to_ptr.hbm [resolvable:$true] %s686_s18 }
  0xba   : > { %s3189_s7 = sshra.s32 %s687_s18, 4  ;;  %s3190_s7 = int_to_ptr.hbm [resolvable:$true] %s3189_s7 }
  0xbb   : > { %s3191_s0 = scalar_lea.hbm %s3190_s7, 1  ;;  %p3197_p6 = scmp.lt.s32.totalorder %s3190_s7, %s4052_s20 }
  0xbc   : > { %p3192_p13 = scmp.ne.s32.totalorder %s3190_s7, %s3191_s0  ;;  %p3198_p8 = scmp.lt.s32.totalorder %s3196_s19, %s3191_s0 }
  0xbe   : > { %p3194_p0 = pnand %p3192_p13, %p3459_p7  ;;  %p3199_p9 = por %p3198_p8, %p3197_p6 }
  0xc0   : > { %p3195_p4 = pneg %p3194_p0 }
  0xc2   : > { %p3200_p10 = pnand %p3199_p9, %p3195_p4 }
  0xc4   : > { %3203 = shalt.err (!%p3200_p10)
}
  0xc5   : > { %2785 = dma.hbm_to_vmem [thread:$0]  (!%p3448_p5), %s687_s18, 16, %s689_s16, %s679_s4  }
  0xc6   : > { %697 = sbr.rel (%p3548_p3) target bundleno = 2743 (0xab7), region = 84 }
  0xcb   : > { %3264 = dma.done.wait (%p148_p12), [#allocation3], 512  }
  0xcc   : > { %3266 = vsyncadd (%p148_p12), [#allocation3], 4294966784  ;;  %s704_s2 = sand.u32 1, %s3534_s8   ;;  %s3657_s24 = sand.u32 1, %s3297_s22  }
  0xcd   : > { %s2726_s30 = smul.u32 192, %s3657_s24  ;;  %s705_s14 = scalar_lea.sflag [#allocation6], %s704_s2 }
  0xcf   : > { %s3660_s17 = scalar_lea.vmem [#allocation5], %s2726_s30 }
  0xd0   : > { %3268 = dma.done.wait (%p3543_p1), %s705_s14, 4096  }
  0xd1   : > { %3270 = vsyncadd (%p3543_p1), %s705_s14, 4294963200  ;;  %s2360_s27 = sshll.u32 %s3657_s24, 6  ;;  %s725_s3 = scalar_lea.sflag [#allocation9], %s704_s2 }
  0xd2   : > { %s3667_s23 = scalar_lea.vmem [#allocation7], %s2360_s27 }
  0xd3   : > { %3272 = dma.done.wait (%p3543_p1), %s725_s3, 32  }
  0xd4   : > { %3274 = vsyncadd (%p3543_p1), %s725_s3, 4294967264  ;;  %s2361_s26 = sshll.u32 %s3657_s24, 7  ;;  %s743_s5 = scalar_lea.sflag [#allocation12], %s704_s2 }
  0xd5   : > { %s3676_s16 = scalar_lea.vmem [#allocation11], %s2361_s26 }
  0xd6   : > { %3276 = dma.done.wait (%p3543_p1), %s743_s5, 2080  }
  0xd7   : > { %3278 = vsyncadd (%p3543_p1), %s743_s5, 4294965216  ;;  %s2362_s4 = sshll.u32 %s3657_s24, 1  ;;  %s763_s0 = scalar_lea.sflag [#allocation15], %s704_s2 }
  0xd8   : > { %s3683_s7 = scalar_lea.vmem [#allocation13], %s2362_s4  ;;  %s3685_s29 = scalar_lea.vmem [#allocation14], %s2361_s26 }
  0xd9   : > { %3280 = dma.done.wait (%p3543_p1), %s763_s0, 2064  }
  0xda   : > { %3282 = vsyncadd (%p3543_p1), %s763_s0, 4294965232  ;;  %s782_s19 = scalar_lea.sflag [#allocation18], %s3657_s24 }
  0xdb   : > { %3284 = dma.done.wait (%p3543_p1), %s782_s19, 16  }
  0xdc   : > { %3286 = vsyncadd (%p3543_p1), %s782_s19, 4294967280  ;;  %p875_p5 = scmp.lt.s32.totalorder %s3534_s8, 1  ;;  %s4053_s27 = sld [smem:[#allocation36_spill]] }
  0xdd   : > { %s4054_s4 = sld [smem:[#allocation39_spill]] }
  0xde   : > { %s3700_s15 = scalar_select %p875_p5, %s3534_s8, 1 }
  0xdf   : > { %s4055_s19 = sld [smem:[#allocation35_spill]] }
  0xe0   : > { %s2727_s2 = smul.u32 3, %s3700_s15  ;;  %s4056_s1 = sld [smem:[#allocation30_spill]] (!%p2344_p2) }
  0xe1   : > { %888 = sbr.rel (%p2344_p2) target bundleno = 486 (0x1e6), region = 128  ;;  %s4057_s30 = sld [smem:[#allocation32_spill]] (!%p2344_p2) }
  0xe2   : > { %s881_s3 = scalar_lea.vmem %s4053_s27, %s3700_s15 }
  0xe3   : > { %s884_s0 = scalar_lea.vmem %s4054_s4, %s3700_s15 }
  0xe5   : > { %s3714_s25 = scalar_lea.vmem %s4055_s19, %s2727_s2 }
  0xe6   : > { %v891_v0 = vld [vmem:[%s4056_s1] sm:$0xff]  ;;  %v908_v1 = vld [vmem:[#allocation2 + $0x18] sm:$0xff]  ;;  %v3314_v2 = vmov 0   ;;  %v907_v3 = vld [vmem:[#allocation2 + $0x10] sm:$0xff]  ;;  %v889_v7 = vlaneseq  ;;  %vm911_vm0 = vcmask 261120   ;;  %v3315_v10 = vmov 0.0  }
  0xe7   : > { %2839 = vset.pattern.permute.xlu0 %v3314_v2  ;;  %930 = vmatpush.msra.mxu0 %v908_v1  ;;  %v906_v4 = vld [vmem:[#allocation2 + $0x8] sm:$0xff]  ;;  %v905_v6 = vld [vmem:[#allocation2] sm:$0xff] }
  0xe8   : > { %894 = vperm.xlu0 %2839, %v891_v0   ;;  %2720 = vmatpush.msra.mxu1 %v908_v1  ;;  %v892_v5 = vld [vmem:[%s4056_s1 + $0x8] sm:$0xff]  ;;  %v890_v8 = vand.u32 127, %v889_v7  ;;  %v909_v14 = vld [vmem:[%s4057_s30] sm:$0xff] }
  0xe9   : > { %931 = vmatpush.msra.mxu0 %v907_v3  ;;  %v910_v17 = vld [vmem:[%s4057_s30 + $0x8] sm:$0xff] }
  0xea   : > { %2721 = vmatpush.msra.mxu1 %v907_v3 }
  0xeb   : > { %932 = vmatpush.msra.mxu0 %v906_v4 }
  0xec   : > { %2722 = vmatpush.msra.mxu1 %v906_v4 }
  0xed   : > { %933 = vmatpush.msra.mxu0 %v905_v6 }
  0xee   : > { %2723 = vmatpush.msra.mxu1 %v905_v6 }
  0xf0   : > { %897 = vperm.xlu0 %2839, %v892_v5  }
 0x15a   : > { %v895_v9 = vpop.permute.xlu0 %894 }
 0x15b   : > { %vm899_vm1 = vcmp.eq.s32.totalorder %v890_v8, %v895_v9 }
 0x15c   : > { %v2365_v11 = vsel %vm899_vm1, 1.0, %v3315_v10 }
 0x15d   : > { %2367 = vmatmul.msk.f32.vlgmr.msra.gmra.mxu0 %vm911_vm0, %v2365_v11 }
 0x162   : > { %v898_v12 = vpop.permute.xlu0 %897 }
 0x163   : > { %vm900_vm2 = vcmp.eq.s32.totalorder %v890_v8, %v898_v12 }
 0x164   : > { %v2366_v13 = vsel %vm900_vm2, 1.0, %v3315_v10 }
 0x165   : > { %2368 = vmatmul.msk.f32.vlgmr.msra.gmra.mxu1 %vm911_vm0, %v2366_v13 }
 0x1da   : > { %v935_v15 = vpop.f32.mrf.mxu0 }
 0x1db   : > { %v936_v16 = vadd.f32 %v935_v15, %v909_v14 }
 0x1dd   : > { %941 = vst [vmem:[#allocation19] sm:$0xff] %v936_v16 }
 0x1e2   : > { %v938_v18 = vpop.f32.mrf.mxu1 }
 0x1e3   : > { %v939_v19 = vadd.f32 %v938_v18, %v910_v17 }
 0x1e5   : > { %942 = vst [vmem:[#allocation19 + $0x8] sm:$0xff] %v939_v19 }
 0x1e6 PF: > { %v2677_v20 = vld [vmem:[%s3660_s17 + $0xac] sm:$0xf]  ;;  %v2457_v21 = vld [vmem:[%s3660_s17 + $0xb4] sm:$0xf0]  ;;  %v2674_v22 = vld [vmem:[%s3660_s17 + $0x94] sm:$0xf] }
 0x1e7   : > { %v2460_v23 = vor.u32 %v2677_v20, %v2457_v21  ;;  %v2445_v24 = vld [vmem:[%s3660_s17 + $0x9c] sm:$0xf0]  ;;  %v2455_v25 = vld [vmem:[%s3660_s17 + $0xa8] sm:$0xf]  ;;  %v2678_v26 = vld [vmem:[%s3660_s17 + $0xb0] sm:$0xf0] }
 0x1e8   : > { %v2456_v27 = vor.u32 %v2678_v26, %v2455_v25  ;;  %v2443_v28 = vld [vmem:[%s3660_s17 + $0x90] sm:$0xf]  ;;  %v2448_v29 = vor.u32 %v2674_v22, %v2445_v24  ;;  %v2675_v30 = vld [vmem:[%s3660_s17 + $0x98] sm:$0xf0]  ;;  %v2433_v32 = vld [vmem:[%s3660_s17 + $0x84] sm:$0xf0] }
 0x1e9   : > { %1128 = vmatpush.bf16.msra.mxu1 %v2460_v23  ;;  %v2671_v31 = vld [vmem:[%s3660_s17 + $0x7c] sm:$0xf]  ;;  %v2444_v33 = vor.u32 %v2675_v30, %v2443_v28  ;;  %v2431_v34 = vld [vmem:[%s3660_s17 + $0x78] sm:$0xf]  ;;  %v2672_v35 = vld [vmem:[%s3660_s17 + $0x80] sm:$0xf0] }
 0x1ea   : > { %1114 = vmatpush.bf16.msra.mxu0 %v2456_v27  ;;  %v2436_v36 = vor.u32 %v2671_v31, %v2433_v32  ;;  %v2668_v37 = vld [vmem:[%s3660_s17 + $0x64] sm:$0xf]  ;;  %v2421_v38 = vld [vmem:[%s3660_s17 + $0x6c] sm:$0xf0]  ;;  %v2432_v39 = vor.u32 %v2672_v35, %v2431_v34  ;;  %v2419_v40 = vld [vmem:[%s3660_s17 + $0x60] sm:$0xf] }
 0x1eb   : > { %v2669_v41 = vld [vmem:[%s3660_s17 + $0x68] sm:$0xf0]  ;;  %v2424_v42 = vor.u32 %v2668_v37, %v2421_v38  ;;  %v2463_v44 = vld [vmem:[%s3660_s17 + $0xb0] sm:$0xf]  ;;  %v2679_v45 = vld [vmem:[%s3660_s17 + $0xb8] sm:$0xf0] }
 0x1ec   : > { %v2665_v43 = vld [vmem:[%s3660_s17 + $0x4c] sm:$0xf]  ;;  %v2409_v46 = vld [vmem:[%s3660_s17 + $0x54] sm:$0xf0]  ;;  %v2420_v47 = vor.u32 %v2669_v41, %v2419_v40  ;;  %v2464_v48 = vor.u32 %v2679_v45, %v2463_v44  ;;  %v2676_v50 = vld [vmem:[%s3660_s17 + $0xa0] sm:$0xf0] }
 0x1ed   : > { %1129 = vmatpush.bf16.msra.mxu1 %v2448_v29  ;;  %v2451_v49 = vld [vmem:[%s3660_s17 + $0x98] sm:$0xf]  ;;  %v2407_v51 = vld [vmem:[%s3660_s17 + $0x48] sm:$0xf]  ;;  %v2666_v52 = vld [vmem:[%s3660_s17 + $0x50] sm:$0xf0]  ;;  %v2412_v54 = vor.u32 %v2665_v43, %v2409_v46 }
 0x1ee   : > { %1115 = vmatpush.bf16.msra.mxu0 %v2444_v33  ;;  %1142 = vmatpush.bf16.msra.mxu2 %v2464_v48  ;;  %v2452_v53 = vor.u32 %v2676_v50, %v2451_v49  ;;  %v2662_v55 = vld [vmem:[%s3660_s17 + $0x34] sm:$0xf]  ;;  %v2439_v56 = vld [vmem:[%s3660_s17 + $0x80] sm:$0xf]  ;;  %v2673_v57 = vld [vmem:[%s3660_s17 + $0x88] sm:$0xf0]  ;;  %v2408_v59 = vor.u32 %v2666_v52, %v2407_v51 }
 0x1ef   : > { %v2397_v58 = vld [vmem:[%s3660_s17 + $0x3c] sm:$0xf0]  ;;  %v2395_v60 = vld [vmem:[%s3660_s17 + $0x30] sm:$0xf]  ;;  %v2663_v61 = vld [vmem:[%s3660_s17 + $0x38] sm:$0xf0]  ;;  %v2440_v63 = vor.u32 %v2673_v57, %v2439_v56 }
 0x1f0   : > { %v2427_v62 = vld [vmem:[%s3660_s17 + $0x68] sm:$0xf]  ;;  %v2400_v0 = vor.u32 %v2662_v55, %v2397_v58  ;;  %v2670_v1 = vld [vmem:[%s3660_s17 + $0x70] sm:$0xf0]  ;;  %v2659_v2 = vld [vmem:[%s3660_s17 + $0x1c] sm:$0xf]  ;;  %v2396_v4 = vor.u32 %v2663_v61, %v2395_v60 }
 0x1f1   : > { %1130 = vmatpush.bf16.msra.mxu1 %v2436_v36  ;;  %v2385_v3 = vld [vmem:[%s3660_s17 + $0x24] sm:$0xf0]  ;;  %v2383_v5 = vld [vmem:[%s3660_s17 + $0x18] sm:$0xf]  ;;  %v2660_v6 = vld [vmem:[%s3660_s17 + $0x20] sm:$0xf0]  ;;  %v2428_v7 = vor.u32 %v2670_v1, %v2427_v62 }
 0x1f2   : > { %1116 = vmatpush.bf16.msra.mxu0 %v2432_v39  ;;  %1143 = vmatpush.bf16.msra.mxu2 %v2452_v53  ;;  %v2388_v8 = vor.u32 %v2659_v2, %v2385_v3  ;;  %v2415_v9 = vld [vmem:[%s3660_s17 + $0x50] sm:$0xf]  ;;  %v2667_v10 = vld [vmem:[%s3660_s17 + $0x58] sm:$0xf0]  ;;  %v2656_v11 = vld [vmem:[%s3660_s17 + $0x4] sm:$0xf]  ;;  %v2384_v13 = vor.u32 %v2660_v6, %v2383_v5 }
 0x1f3   : > { %v2373_v12 = vld [vmem:[%s3660_s17 + $0xc] sm:$0xf0]  ;;  %v2371_v14 = vld [vmem:[%s3660_s17] sm:$0xf]  ;;  %v2657_v15 = vld [vmem:[%s3660_s17 + $0x8] sm:$0xf0]  ;;  %v2416_v17 = vor.u32 %v2667_v10, %v2415_v9 }
 0x1f4   : > { %v3772_v16 = vld [vmem:[#allocation19] sm:$0xff]  ;;  %v2376_v18 = vor.u32 %v2656_v11, %v2373_v12  ;;  %v3774_v19 = vld [vmem:[#allocation19 + $0x8] sm:$0xff]  ;;  %v2664_v21 = vld [vmem:[%s3660_s17 + $0x40] sm:$0xf0]  ;;  %v2372_v22 = vor.u32 %v2657_v15, %v2371_v14  ;;  %vm1157_vm3 = vcmask 261120   ;;  %s3316_s26 = smov 64  }
 0x1f5   : > { %1131 = vmatpush.bf16.msra.mxu1 %v2424_v42  ;;  %v2403_v20 = vld [vmem:[%s3660_s17 + $0x38] sm:$0xf]  ;;  %v945_v23 = vpack.c.bf16 %v3774_v19, %v3772_v16  ;;  %v2391_v25 = vld [vmem:[%s3660_s17 + $0x20] sm:$0xf]  ;;  %v2661_v26 = vld [vmem:[%s3660_s17 + $0x28] sm:$0xf0] }
 0x1f6   : > { %1117 = vmatpush.bf16.msra.mxu0 %v2420_v47  ;;  %1144 = vmatpush.bf16.msra.mxu2 %v2440_v63  ;;  %v2404_v24 = vor.u32 %v2664_v21, %v2403_v20  ;;  %v2392_v27 = vor.u32 %v2661_v26, %v2391_v25  ;;  %v2379_v28 = vld [vmem:[%s3660_s17 + $0x8] sm:$0xf]  ;;  %v2658_v29 = vld [vmem:[%s3660_s17 + $0x10] sm:$0xf0]  ;;  %v978_v32 = vld [vmem:[%s3714_s25] sm:$0x7] }
 0x1f7   : > { %v2380_v30 = vor.u32 %v2658_v29, %v2379_v28  ;;  %v981_v33 = vperm.slane %v978_v32, 1  ;;  %v980_v36 = vperm.slane %v978_v32, 0  ;;  %s3317_s5 = smov 96   ;;  %v982_v43 = vperm.slane %v978_v32, 2  ;;  %s3318_s17 = smov 32  }
 0x1f8   : > { %s4058_s10 = sld [smem:[#allocation33_spill]]  ;;  %vm1200_vm4 = vcmask 130048   ;;  %vm1580_vm5 = vcmask 523264   ;;  %vm1583_vm6 = vcmask 785408   ;;  %s4064_s18 = scalar_lea.vmem [#allocation17], %s3657_s24 }
 0x1f9   : > { %1132 = vmatpush.bf16.msra.mxu1 %v2412_v54  ;;  %s3320_s15 = smov [#allocation19]   ;;  %p2789_p7 = scmp.eq.s32.totalorder %s3534_s8, 1 }
 0x1fa   : > { %1118 = vmatpush.bf16.msra.mxu0 %v2408_v59  ;;  %1145 = vmatpush.bf16.msra.mxu2 %v2428_v7 }
 0x1fd   : > { %1133 = vmatpush.bf16.msra.mxu1 %v2400_v0 }
 0x1fe   : > { %1119 = vmatpush.bf16.msra.mxu0 %v2396_v4  ;;  %1146 = vmatpush.bf16.msra.mxu2 %v2416_v17  ;;  %v3815_v53 = vld [vmem:[%s4058_s10] ss:$0 sm:$0xff] }
 0x201   : > { %1134 = vmatpush.bf16.msra.mxu1 %v2388_v8 }
 0x202   : > { %1120 = vmatpush.bf16.msra.mxu0 %v2384_v13  ;;  %1147 = vmatpush.bf16.msra.mxu2 %v2404_v24 }
 0x205   : > { %1135 = vmatpush.bf16.msra.mxu1 %v2376_v18 }
 0x206   : > { %1121 = vmatpush.bf16.msra.mxu0 %v2372_v22  ;;  %1148 = vmatpush.bf16.msra.mxu2 %v2392_v27 }
 0x208   : > { %1136 = vmatmul.bf16.vlgmr.msra.gmra.mxu1 %v945_v23 }
 0x209   : > { %1122 = vmatmul.bf16.vlgmr.msra.gmra.mxu0 %v945_v23 }
 0x20a   : > { %1149 = vmatpush.bf16.msra.mxu2 %v2380_v30 }
 0x20d   : > { %1150 = vmatmul.bf16.vlgmr.msra.gmra.mxu2 %v945_v23 }
 0x285   : > { %v1137_v31 = vpop.f32.mrf.mxu1 }
 0x286   : > { %v1123_v37 = vpop.f32.mrf.mxu0  ;;  %v1138_v38 = vadd.f32 %v1137_v31, %v981_v33 }
 0x287   : > { %v3788_v39 = vadd.f32 %v1123_v37, %v980_v36 }
 0x28d   : > { %v1139_v34 = vpop.f32.mrf.mxu1 }
 0x28e   : > { %v1140_v35 = vadd.f32 %v1139_v34, %v981_v33  ;;  %v1125_v40 = vpop.f32.mrf.mxu0 }
 0x28f   : > { %v1126_v41 = vadd.f32 %v1125_v40, %v980_v36 }
 0x290   : > { %1360 = vrot.lane.b32.xlu1 %v1140_v35, %s3316_s26  ;;  %1258 = vrot.lane.b32.xlu2 %v1140_v35, %s3317_s5  ;;  %v1151_v42 = vpop.f32.mrf.mxu2 }
 0x291   : > { %2465 = vmatpush.xpose.msk.msra.mxu3 %vm1157_vm3, %v1140_v35  ;;  %v3797_v45 = vadd.f32 %v1151_v42, %v982_v43 }
 0x295   : > { %2466 = vmatpush.xpose.msk.msra.mxu3 %vm1157_vm3, %v1138_v38 }
 0x298   : > { %2467 = vmatmul.msk.f32.vlgmr.msra.gmra.mxu3 %vm1157_vm3, %v3788_v39  ;;  %1256 = vrot.lane.b32.xlu2 %v1138_v38, %s3317_s5  ;;  %v1153_v44 = vpop.f32.mrf.mxu2 }
 0x299   : > { %v3799_v46 = vadd.f32 %v1153_v44, %v982_v43 }
 0x29b   : > { %1243 = vmatpush.msrb.mxu3 %v3799_v46 }
 0x29d   : > { %1244 = vmatpush.msrb.mxu3 %v3797_v45 }
 0x2a0   : > { %2468 = vmatmul.msk.f32.gmra.mxu3 %vm1157_vm3, %v1126_v41  ;;  %1358 = vrot.lane.b32.xlu2 %v1138_v38, %s3316_s26 }
 0x2a8   : > { %1254 = vrot.lane.b32.xlu2 %v1126_v41, %s3317_s5 }
 0x2b0   : > { %1354 = vrot.lane.b32.xlu2 %v3788_v39, %s3316_s26 }
 0x2b8   : > { %1458 = vrot.lane.b32.xlu2 %v1138_v38, %s3318_s17 }
 0x2c0   : > { %1456 = vrot.lane.b32.xlu2 %v1126_v41, %s3318_s17 }
 0x2ea   : > { %v1259_v47 = vpop.permute.xlu2 %1258 }
 0x2eb   : > { %2471 = vmatpush.xpose.msk.msra.mxu3 %vm1157_vm3, %v1259_v47 }
 0x2f2   : > { %v1257_v48 = vpop.permute.xlu2 %1256 }
 0x2f3   : > { %2472 = vmatpush.xpose.msk.msra.mxu3 %vm1157_vm3, %v1257_v48 }
 0x2fa   : > { %v1359_v49 = vpop.permute.xlu2 %1358 }
 0x302   : > { %v1361_v50 = vpop.permute.xlu1 %1360  ;;  %v1255_v51 = vpop.permute.xlu2 %1254 }
 0x303   : > { %2477 = vmatpush.xpose.msk.msrb.mxu2 %vm1157_vm3, %v1361_v50 }
 0x307   : > { %2478 = vmatpush.xpose.msk.msrb.mxu2 %vm1157_vm3, %v1359_v49 }
 0x30a   : > { %v1355_v52 = vpop.permute.xlu2 %1354 }
 0x30b   : > { %2479 = vmatmul.msk.f32.vlgmr.msrb.gmra.mxu2 %vm1157_vm3, %v1355_v52 }
 0x312   : > { %v1459_v21 = vpop.permute.xlu2 %1458 }
 0x31a   : > { %v1457_v27 = vpop.permute.xlu2 %1456 }
 0x31b   : > { %v1187_v54 = vpop.f32.mrf.mxu3 }
 0x31c   : > { %v1193_v55 = vmul.f32 0.17677669, %v1187_v54 }
 0x31e   : > { %v1198_v56 = vadd.f32 %v3815_v53, %v1193_v55 }
 0x320   : > { %v1201_v57 = vsel %vm1200_vm4, %v1198_v56, -inf }
 0x321   : > { %1202 = vmax.xlane.f32.xlu0 %v1201_v57 }
 0x323   : > { %v1190_v58 = vpop.f32.mrf.mxu3 }
 0x324   : > { %v1194_v59 = vmul.f32 0.17677669, %v1190_v58 }
 0x326   : > { %v1199_v60 = vadd.f32 %v3815_v53, %v1194_v59 }
 0x328   : > { %v1204_v61 = vsel %vm1200_vm4, %v1199_v60, -inf }
 0x329   : > { %1205 = vmax.xlane.f32.xlu0 %v1204_v61 }
 0x33d   : > { %1252 = vrot.lane.b32.xlu0 %v3788_v39, %s3317_s5 }
 0x345   : > { %1460 = vrot.lane.b32.xlu0 %v1140_v35, %s3318_s17 }
 0x34d   : > { %1356 = vrot.lane.b32.xlu0 %v1126_v41, %s3316_s26 }
 0x38e   : > { %v1387_v62 = vpop.f32.mrf.mxu2 }
 0x38f   : > { %v1393_v63 = vmul.f32 0.17677669, %v1387_v62 }
 0x391   : > { %v1395_v0 = vadd.f32 %v3815_v53, %v1393_v63 }
 0x393   : > { %v1397_v1 = vsel %vm1200_vm4, %v1395_v0, -inf }
 0x394   : > { %v1203_v2 = vpop.xlane.xlu0 %1202  ;;  %1398 = vmax.xlane.f32.xlu2 %v1397_v1 }
 0x395   : > { %v1207_v3 = vsub.f32 %v1198_v56, %v1203_v2  ;;  %v2840_v56 = vpack.i.bf16 %v3797_v45, %v3799_v46 }
 0x397   : > { %v1209_v4 = vmul.f32 1.442695, %v1207_v3 }
 0x399   : > { %2877 = vpow2.f32 %v1209_v4 }
 0x39c   : > { %v1206_v5 = vpop.xlane.xlu0 %1205 }
 0x39d   : > { %v1208_v6 = vsub.f32 %v1199_v60, %v1206_v5 }
 0x39f   : > { %v2878_v7 = vpop.eup %2877  ;;  %v1211_v8 = vmul.f32 1.442695, %v1208_v6 }
 0x3a0   : > { %v1213_v9 = vsel %vm1200_vm4, %v2878_v7, 0.0 }
 0x3a1   : > { %2879 = vpow2.f32 %v1211_v8  ;;  %1214 = vadd.xlane.f32.xlu1 %v1213_v9 }
 0x3a7   : > { %v2880_v10 = vpop.eup %2879 }
 0x3a8   : > { %v1216_v11 = vsel %vm1200_vm4, %v2880_v10, 0.0 }
 0x3a9   : > { %1217 = vadd.xlane.f32.xlu1 %v1216_v11 }
 0x3af   : > { %v1253_v12 = vpop.permute.xlu0 %1252 }
 0x3b7   : > { %v1461_v13 = vpop.permute.xlu0 %1460 }
 0x3bf   : > { %v1357_v14 = vpop.permute.xlu0 %1356 }
 0x3c0   : > { %2480 = vmatmul.msk.f32.gmra.mxu2 %vm1157_vm3, %v1357_v14 }
 0x3c2   : > { %1454 = vrot.lane.b32.xlu1 %v3788_v39, %s3318_s17 }
 0x407   : > { %v1399_v37 = vpop.xlane.xlu2 %1398 }
 0x408   : > { %v1403_v40 = vsub.f32 %v1395_v0, %v1399_v37 }
 0x40a   : > { %v1405_v42 = vmul.f32 1.442695, %v1403_v40 }
 0x414   : > { %v1215_v15 = vpop.xlane.xlu1 %1214 }
 0x415   : > { %2881 = vrcp.f32 %v1215_v15 }
 0x41b   : > { %v2882_v17 = vpop.eup %2881 }
 0x41c   : > { %v1218_v18 = vpop.xlane.xlu1 %1217  ;;  %v1221_v20 = vmul.f32 %v2882_v17, %v2878_v7 }
 0x41d   : > { %2883 = vrcp.f32 %v1218_v18 }
 0x41e   : > { %2469 = vmatmul.msk.f32.vlgmr.msrb.gmra.mxu3 %vm1200_vm4, %v1221_v20  ;;  %2885 = vpow2.f32 %v1405_v42 }
 0x41f   : > { %2483 = vmatpush.xpose.msk.msrb.mxu3 %vm1157_vm3, %v1461_v13 }
 0x423   : > { %v2884_v22 = vpop.eup %2883  ;;  %2484 = vmatpush.xpose.msk.msrb.mxu3 %vm1157_vm3, %v1459_v21 }
 0x424   : > { %v1222_v23 = vmul.f32 %v2884_v22, %v2880_v10 }
 0x426   : > { %2470 = vmatmul.msk.f32.gmra.mxu3 %vm1200_vm4, %v1222_v23 }
 0x42e   : > { %2473 = vmatmul.msk.f32.vlgmr.msra.gmra.mxu3 %vm1157_vm3, %v1253_v12 }
 0x434   : > { %v1455_v24 = vpop.permute.xlu1 %1454 }
 0x436   : > { %2474 = vmatmul.msk.f32.gmra.mxu3 %vm1157_vm3, %v1255_v51  ;;  %v3852_v51 = vpop.eup %2885 }
 0x437   : > { %v1409_v54 = vsel %vm1200_vm4, %v3852_v51, 0.0 }
 0x43e   : > { %2485 = vmatmul.msk.f32.vlgmr.msrb.gmra.mxu3 %vm1157_vm3, %v1455_v24 }
 0x443   : > { %v1390_v25 = vpop.f32.mrf.mxu2 }
 0x444   : > { %v1394_v26 = vmul.f32 0.17677669, %v1390_v25 }
 0x446   : > { %2486 = vmatmul.msk.f32.gmra.mxu3 %vm1157_vm3, %v1457_v27  ;;  %v1396_v28 = vadd.f32 %v3815_v53, %v1394_v26 }
 0x448   : > { %v1400_v29 = vsel %vm1200_vm4, %v1396_v28, -inf }
 0x449   : > { %1401 = vmax.xlane.f32.xlu0 %v1400_v29 }
 0x4a1   : > { %v3842_v30 = vpop.f32.mrf.mxu3 }
 0x4a9   : > { %v3844_v31 = vpop.f32.mrf.mxu3 }
 0x4b1   : > { %v1285_v32 = vpop.f32.mrf.mxu3 }
 0x4b2   : > { %v1291_v33 = vmul.f32 0.17677669, %v1285_v32 }
 0x4b4   : > { %v1293_v34 = vadd.f32 %v3815_v53, %v1291_v33 }
 0x4b6   : > { %v1295_v35 = vsel %vm1200_vm4, %v1293_v34, -inf }
 0x4b7   : > { %1296 = vmax.xlane.f32.xlu1 %v1295_v35 }
 0x4b9   : > { %v1288_v36 = vpop.f32.mrf.mxu3 }
 0x4ba   : > { %v1292_v38 = vmul.f32 0.17677669, %v1288_v36 }
 0x4bc   : > { %v1294_v39 = vadd.f32 %v3815_v53, %v1292_v38  ;;  %v1402_v57 = vpop.xlane.xlu0 %1401 }
 0x4bd   : > { %v1404_v58 = vsub.f32 %v1396_v28, %v1402_v57 }
 0x4be   : > { %v1298_v41 = vsel %vm1200_vm4, %v1294_v39, -inf }
 0x4bf   : > { %1299 = vmax.xlane.f32.xlu0 %v1298_v41  ;;  %v1407_v59 = vmul.f32 1.442695, %v1404_v58  ;;  %v2687_v58 = vld [vmem:[%s3667_s23 + $0x38] sm:$0xff] }
 0x4c0   : > { %1655 = vmatpush.bf16.msrb.mxu1 %v2687_v58  ;;  %v2555_v58 = vld [vmem:[%s3676_s16 + $0x40] sm:$0xf] }
 0x4c1   : > { %v1487_v43 = vpop.f32.mrf.mxu3  ;;  %2887 = vpow2.f32 %v1407_v59  ;;  %v2686_v59 = vld [vmem:[%s3667_s23 + $0x30] sm:$0xff] }
 0x4c2   : > { %v1493_v44 = vmul.f32 0.17677669, %v1487_v43 }
 0x4c4   : > { %v1495_v47 = vadd.f32 %v3815_v53, %v1493_v44  ;;  %1656 = vmatpush.bf16.msrb.mxu1 %v2686_v59  ;;  %v2697_v59 = vld [vmem:[%s3676_s16 + $0x44] sm:$0xf0] }
 0x4c6   : > { %v1497_v48 = vsel %vm1200_vm4, %v1495_v47, -inf }
 0x4c7   : > { %1498 = vmax.xlane.f32.xlu1 %v1497_v48  ;;  %v2888_v60 = vpop.eup %2887 }
 0x4c8   : > { %v1412_v61 = vsel %vm1200_vm4, %v2888_v60, 0.0 }
 0x4c9   : > { %v1490_v49 = vpop.f32.mrf.mxu3 }
 0x4ca   : > { %v1494_v50 = vmul.f32 0.17677669, %v1490_v49 }
 0x4cc   : > { %v1496_v52 = vadd.f32 %v3815_v53, %v1494_v50 }
 0x4ce   : > { %v1500_v55 = vsel %vm1200_vm4, %v1496_v52, -inf }
 0x4cf   : > { %1410 = vadd.xlane.f32.xlu1 %v1409_v54  ;;  %1501 = vmax.xlane.f32.xlu2 %v1500_v55 }
 0x4d3   : > { %2841 = vrot.lane.b32.xlu0 %v2840_v56, %s3317_s5 }
 0x4fd   : > { %1413 = vadd.xlane.f32.xlu0 %v1412_v61  ;;  %v2684_v61 = vld [vmem:[%s3667_s23 + $0x20] sm:$0xff] }
 0x52a   : > { %v1297_v53 = vpop.xlane.xlu1 %1296 }
 0x52b   : > { %v1301_v62 = vsub.f32 %v1293_v34, %v1297_v53  ;;  %v2683_v53 = vld [vmem:[%s3667_s23 + $0x18] sm:$0xff] }
 0x52d   : > { %v1303_v63 = vmul.f32 1.442695, %v1301_v62  ;;  %v2682_v62 = vld [vmem:[%s3667_s23 + $0x10] sm:$0xff] }
 0x52f   : > { %2889 = vpow2.f32 %v1303_v63  ;;  %v2681_v63 = vld [vmem:[%s3667_s23 + $0x8] sm:$0xff] }
 0x532   : > { %v1300_v0 = vpop.xlane.xlu0 %1299 }
 0x533   : > { %v1302_v1 = vsub.f32 %v1294_v39, %v1300_v0  ;;  %v2680_v0 = vld [vmem:[%s3667_s23] sm:$0xff] }
 0x535   : > { %v2890_v2 = vpop.eup %2889  ;;  %v1305_v3 = vmul.f32 1.442695, %v1302_v1 }
 0x536   : > { %v1307_v45 = vsel %vm1200_vm4, %v2890_v2, 0.0 }
 0x537   : > { %2891 = vpow2.f32 %v1305_v3  ;;  %1308 = vadd.xlane.f32.xlu1 %v1307_v45 }
 0x53a   : > { %v1499_v46 = vpop.xlane.xlu1 %1498 }
 0x53b   : > { %v1503_v4 = vsub.f32 %v1495_v47, %v1499_v46 }
 0x53d   : > { %v2892_v5 = vpop.eup %2891  ;;  %v1505_v6 = vmul.f32 1.442695, %v1503_v4 }
 0x53e   : > { %v1310_v7 = vsel %vm1200_vm4, %v2892_v5, 0.0 }
 0x53f   : > { %2893 = vpow2.f32 %v1505_v6  ;;  %1311 = vadd.xlane.f32.xlu2 %v1310_v7 }
 0x542   : > { %v1502_v13 = vpop.xlane.xlu2 %1501  ;;  %v1411_v20 = vpop.xlane.xlu1 %1410 }
 0x543   : > { %v1504_v14 = vsub.f32 %v1496_v52, %v1502_v13 }
 0x545   : > { %v2894_v8 = vpop.eup %2893  ;;  %v2842_v9 = vpop.permute.xlu0 %2841  ;;  %v1507_v15 = vmul.f32 1.442695, %v1504_v14 }
 0x546   : > { %v1509_v10 = vsel %vm1200_vm4, %v2894_v8, 0.0  ;;  %v2843_v11 = vunpack.i.l.bf16 %v2842_v9  ;;  %v2844_v12 = vunpack.i.h.bf16 %v2842_v9 }
 0x547   : > { %1510 = vadd.xlane.f32.xlu1 %v1509_v10  ;;  %2895 = vpow2.f32 %v1507_v15  ;;  %v2871_v15 = vld [vmem:[%s881_s3] ss:$0 sm:$0xff]  ;;  %s4061_s3 = scalar_lea.vmem [#allocation10], %s3657_s24 }
 0x548   : > { %1345 = vmatpush.msrb.mxu0 %v2843_v11 }
 0x54a   : > { %1346 = vmatpush.msrb.mxu0 %v2844_v12 }
 0x54d   : > { %v2896_v17 = vpop.eup %2895 }
 0x54e   : > { %v1512_v18 = vsel %vm1200_vm4, %v2896_v17, 0.0 }
 0x557   : > { %2846 = vrot.lane.b32.xlu2 %v2840_v56, %s3316_s26 }
 0x560   : > { %2851 = vrot.lane.b32.xlu1 %v2840_v56, %s3318_s17 }
 0x570   : > { %v1414_v26 = vpop.xlane.xlu0 %1413 }
 0x580   : > { %1513 = vadd.xlane.f32.xlu2 %v1512_v18 }
 0x5aa   : > { %v1309_v21 = vpop.xlane.xlu1 %1308 }
 0x5ab   : > { %2897 = vrcp.f32 %v1309_v21 }
 0x5b1   : > { %v2898_v22 = vpop.eup %2897 }
 0x5b2   : > { %v1312_v23 = vpop.xlane.xlu2 %1311  ;;  %v1315_v24 = vmul.f32 %v2898_v22, %v2890_v2  ;;  %v3319_v22 = vmov 128.0  }
 0x5b3   : > { %2899 = vrcp.f32 %v1312_v23 }
 0x5b4   : > { %2475 = vmatmul.msk.f32.vlgmr.msrb.gmra.mxu0 %vm1200_vm4, %v1315_v24  ;;  %2901 = vrcp.f32 %v1411_v20 }
 0x5b5   : > { %2903 = vrcp.f32 %v1414_v26 }
 0x5b9   : > { %v2900_v25 = vpop.eup %2899 }
 0x5ba   : > { %v2847_v27 = vpop.permute.xlu2 %2846  ;;  %v1316_v28 = vmul.f32 %v2900_v25, %v2892_v5  ;;  %v2902_v29 = vpop.eup %2901 }
 0x5bb   : > { %v2848_v32 = vunpack.i.l.bf16 %v2847_v27  ;;  %v2849_v33 = vunpack.i.h.bf16 %v2847_v27  ;;  %v1417_v34 = vmul.f32 %v2902_v29, %v3852_v51  ;;  %v2904_v35 = vpop.eup %2903  ;;  %v1511_v37 = vpop.xlane.xlu1 %1510 }
 0x5bc   : > { %2476 = vmatmul.msk.f32.gmra.mxu0 %vm1200_vm4, %v1316_v28  ;;  %v1418_v36 = vmul.f32 %v2904_v35, %v2888_v60  ;;  %2905 = vrcp.f32 %v1511_v37  ;;  %v2685_v60 = vld [vmem:[%s3667_s23 + $0x28] sm:$0xff]  ;;  %v2579_v37 = vld [vmem:[%s3676_s16 + $0x70] sm:$0xf] }
 0x5bd   : > { %1445 = vmatpush.msra.mxu2 %v2848_v32  ;;  %1657 = vmatpush.bf16.msrb.mxu1 %v2685_v60  ;;  %v2696_v60 = vld [vmem:[%s3676_s16 + $0x44] sm:$0xf] }
 0x5bf   : > { %1446 = vmatpush.msra.mxu2 %v2849_v33 }
 0x5c0   : > { %2481 = vmatmul.msk.f32.vlgmr.msra.gmra.mxu2 %vm1200_vm4, %v1417_v34 }
 0x5c1   : > { %1658 = vmatpush.bf16.msrb.mxu1 %v2684_v61  ;;  %v2556_v61 = vor.u32 %v2697_v59, %v2555_v58  ;;  %v2873_v59 = vld [vmem:[%s4061_s3] ss:$0 sm:$0xff] }
 0x5c2   : > { %v2906_v39 = vpop.eup %2905 }
 0x5c3   : > { %v1517_v42 = vmul.f32 %v2906_v39, %v2894_v8  ;;  %v2702_v39 = vld [vmem:[%s3676_s16 + $0x74] sm:$0xf] }
 0x5c5   : > { %1659 = vmatpush.bf16.msrb.mxu1 %v2683_v53  ;;  %v2557_v53 = vld [vmem:[%s3676_s16 + $0x48] sm:$0xf0] }
 0x5c8   : > { %2482 = vmatmul.msk.f32.gmra.mxu2 %vm1200_vm4, %v1418_v36 }
 0x5c9   : > { %1660 = vmatpush.bf16.msrb.mxu1 %v2682_v62  ;;  %v2560_v62 = vor.u32 %v2696_v60, %v2557_v53 }
 0x5cd   : > { %1661 = vmatpush.bf16.msrb.mxu1 %v2681_v63  ;;  %v2547_v63 = vld [vmem:[%s3676_s16 + $0x30] sm:$0xf] }
 0x5d1   : > { %1662 = vmatpush.bf16.msrb.mxu1 %v2680_v0  ;;  %v2695_v0 = vld [vmem:[%s3676_s16 + $0x34] sm:$0xf0] }
 0x5d2   : > { %v2852_v38 = vpop.permute.xlu1 %2851 }
 0x5d3   : > { %v2853_v40 = vunpack.i.l.bf16 %v2852_v38  ;;  %v2854_v41 = vunpack.i.h.bf16 %v2852_v38  ;;  %v2703_v38 = vld [vmem:[%s3676_s16 + $0x74] sm:$0xf0] }
 0x5d5   : > { %1545 = vmatpush.msra.mxu0 %v2853_v40  ;;  %v2580_v40 = vor.u32 %v2703_v38, %v2579_v37  ;;  %v2717_v37 = vld [vmem:[%s3685_s29 + $0x68] sm:$0xff] }
 0x5d7   : > { %1546 = vmatpush.msra.mxu0 %v2854_v41  ;;  %v2581_v41 = vld [vmem:[%s3676_s16 + $0x78] sm:$0xf0]  ;;  %1833 = vmatpush.bf16.msrb.mxu2 %v2580_v40  ;;  %v2708_v40 = vld [vmem:[%s3685_s29 + $0x20] sm:$0xff] }
 0x5d8   : > { %2487 = vmatmul.msk.f32.vlgmr.msra.gmra.mxu0 %vm1200_vm4, %v1517_v42  ;;  %v2584_v42 = vor.u32 %v2702_v39, %v2581_v41  ;;  %v2716_v41 = vld [vmem:[%s3685_s29 + $0x60] sm:$0xff] }
 0x5da   : > { %1847 = vmatpush.bf16.msra.mxu3 %v2584_v42 }
 0x5f3   : > { %v1514_v43 = vpop.xlane.xlu2 %1513 }
 0x5f4   : > { %2907 = vrcp.f32 %v1514_v43  ;;  %v2571_v43 = vld [vmem:[%s3676_s16 + $0x60] sm:$0xf] }
 0x5f5   : > { %2909 = vrcp.f32 %v3319_v22 }
 0x5fa   : > { %v2908_v44 = vpop.eup %2907 }
 0x5fb   : > { %v1518_v47 = vmul.f32 %v2908_v44, %v2896_v17  ;;  %v2910_v23 = vpop.eup %2909  ;;  %v2701_v44 = vld [vmem:[%s3676_s16 + $0x64] sm:$0xf0] }
 0x5fc   : > { %v1676_v24 = vmul.f32 128.0, %v2910_v23  ;;  %vm1680_vm7 = vweird.f32 %v2910_v23 }
 0x5fd   : > { %2488 = vmatmul.msk.f32.gmra.mxu0 %vm1200_vm4, %v1518_v47  ;;  %v2700_v47 = vld [vmem:[%s3676_s16 + $0x64] sm:$0xf] }
 0x5fe   : > { %v1677_v25 = vsub.f32 1.0, %v1676_v24  ;;  %v2711_v24 = vld [vmem:[%s3685_s29 + $0x38] sm:$0xff] }
 0x5ff   : > { %1999 = vmatpush.bf16.msrb.mxu0 %v2711_v24 }
 0x600   : > { %v1678_v26 = vmul.f32 %v2910_v23, %v1677_v25  ;;  %v2719_v25 = vld [vmem:[%s3685_s29 + $0x78] sm:$0xff] }
 0x601   : > { %2013 = vmatpush.bf16.msra.mxu1 %v2719_v25 }
 0x602   : > { %v1679_v27 = vadd.f32 %v2910_v23, %v1678_v26 }
 0x604   : > { %v3897_v28 = vsel %vm1680_vm7, %v2910_v23, %v1679_v27 }
 0x631   : > { %v1348_v48 = vpop.f32.mrf.mxu0 }
 0x639   : > { %v1351_v49 = vpop.f32.mrf.mxu0 }
 0x63a   : > { %v2855_v50 = vpack.i.bf16 %v1351_v49, %v1348_v48  ;;  %v2572_v48 = vor.u32 %v2701_v44, %v2571_v43  ;;  %v2573_v49 = vld [vmem:[%s3676_s16 + $0x68] sm:$0xf0] }
 0x63c   : > { %2856 = vrot.lane.b32.xlu1 %v2855_v50, %s3318_s17  ;;  %v2576_v50 = vor.u32 %v2700_v47, %v2573_v49  ;;  %1834 = vmatpush.bf16.msrb.mxu2 %v2572_v48  ;;  %s3322_s17 = smov 8  }
 0x63e   : > { %1848 = vmatpush.bf16.msra.mxu3 %v2576_v50 }
 0x643   : > { %v1448_v51 = vpop.f32.mrf.mxu2 }
 0x64b   : > { %v1451_v52 = vpop.f32.mrf.mxu2 }
 0x64c   : > { %v2860_v54 = vpack.i.bf16 %v1451_v52, %v1448_v51  ;;  %v2563_v51 = vld [vmem:[%s3676_s16 + $0x50] sm:$0xf]  ;;  %v2699_v52 = vld [vmem:[%s3676_s16 + $0x54] sm:$0xf0] }
 0x64e   : > { %2861 = vrot.lane.b32.xlu1 %v2860_v54, %s3316_s26  ;;  %v2698_v54 = vld [vmem:[%s3676_s16 + $0x54] sm:$0xf]  ;;  %s4065_s26 = sld [smem:[#allocation41_spill]] }
 0x655   : > { %v1548_v55 = vpop.f32.mrf.mxu0 }
 0x67a   : > { %v1551_v56 = vpop.f32.mrf.mxu0 }
 0x67b   : > { %v2865_v57 = vpack.i.bf16 %v1551_v56, %v1548_v55  ;;  %v2564_v55 = vor.u32 %v2699_v52, %v2563_v51  ;;  %v2565_v56 = vld [vmem:[%s3676_s16 + $0x58] sm:$0xf0] }
 0x67d   : > { %2866 = vrot.lane.b32.xlu0 %v2865_v57, %s3317_s5  ;;  %v2568_v57 = vor.u32 %v2698_v54, %v2565_v56  ;;  %1835 = vmatpush.bf16.msrb.mxu2 %v2564_v55  ;;  %s2090_s5 = sshll.u32 %s4065_s26, 4  ;;  %s2091_s5 = int_to_ptr.hbm [resolvable:$true] %s2090_s5 }
 0x67f   : > { %1849 = vmatpush.bf16.msra.mxu3 %v2568_v57 }
 0x681   : > { %1836 = vmatpush.bf16.msrb.mxu2 %v2556_v61 }
 0x683   : > { %1850 = vmatpush.bf16.msra.mxu3 %v2560_v62  ;;  %v2707_v62 = vld [vmem:[%s3685_s29 + $0x18] sm:$0xff] }
 0x6ae   : > { %v2857_v1 = vpop.permute.xlu1 %2856 }
 0x6af   : > { %v2859_v3 = vunpack.i.h.bf16 %v2857_v1  ;;  %v2858_v45 = vunpack.i.l.bf16 %v2857_v1  ;;  %v2694_v1 = vld [vmem:[%s3676_s16 + $0x34] sm:$0xf] }
 0x6b1   : > { %v1579_v6 = vsel %vm1157_vm3, %v3844_v31, %v2859_v3  ;;  %v1578_v7 = vsel %vm1157_vm3, %v3842_v30, %v2858_v45  ;;  %v2549_v3 = vld [vmem:[%s3676_s16 + $0x38] sm:$0xf0] }
 0x6b2   : > { %v2552_v45 = vor.u32 %v2694_v1, %v2549_v3  ;;  %v2705_v1 = vld [vmem:[%s3685_s29 + $0x8] sm:$0xff]  ;;  %v2704_v3 = vld [vmem:[%s3685_s29] sm:$0xff] }
 0x6b4   : > { %1851 = vmatpush.bf16.msra.mxu3 %v2552_v45  ;;  %v2712_v45 = vld [vmem:[%s3685_s29 + $0x40] sm:$0xff] }
 0x6c0   : > { %v2862_v2 = vpop.permute.xlu1 %2861 }
 0x6c1   : > { %v2864_v46 = vunpack.i.h.bf16 %v2862_v2  ;;  %v2863_v4 = vunpack.i.l.bf16 %v2862_v2  ;;  %v2548_v2 = vor.u32 %v2695_v0, %v2547_v63  ;;  %v2715_v63 = vld [vmem:[%s3685_s29 + $0x58] sm:$0xff]  ;;  %v2706_v0 = vld [vmem:[%s3685_s29 + $0x10] sm:$0xff] }
 0x6c3   : > { %v1581_v10 = vsel %vm1580_vm5, %v1578_v7, %v2863_v4  ;;  %v1582_v11 = vsel %vm1580_vm5, %v1579_v6, %v2864_v46  ;;  %1837 = vmatpush.bf16.msrb.mxu2 %v2548_v2  ;;  %v2539_v46 = vld [vmem:[%s3676_s16 + $0x20] sm:$0xf]  ;;  %v2693_v4 = vld [vmem:[%s3676_s16 + $0x24] sm:$0xf0]  ;;  %v2541_v7 = vld [vmem:[%s3676_s16 + $0x28] sm:$0xf0] }
 0x6c4   : > { %v2540_v6 = vor.u32 %v2693_v4, %v2539_v46  ;;  %v2713_v2 = vld [vmem:[%s3685_s29 + $0x48] sm:$0xff]  ;;  %v1747_v46 = vld [vmem:[%s3683_s7] sm:$0x3]  ;;  %s4062_s7 = scalar_lea.vmem [#allocation16], %s3657_s24 }
 0x6c7   : > { %1838 = vmatpush.bf16.msrb.mxu2 %v2540_v6  ;;  %v1749_v6 = vperm.slane %v1747_v46, 0 }
 0x6ef   : > { %v2867_v5 = vpop.permute.xlu0 %2866 }
 0x6f0   : > { %v2869_v8 = vunpack.i.h.bf16 %v2867_v5  ;;  %v2868_v9 = vunpack.i.l.bf16 %v2867_v5  ;;  %v2692_v5 = vld [vmem:[%s3676_s16 + $0x24] sm:$0xf] }
 0x6f2   : > { %v1584_v12 = vsel %vm1583_vm6, %v1581_v10, %v2868_v9  ;;  %v1585_v13 = vsel %vm1583_vm6, %v1582_v11, %v2869_v8  ;;  %v2544_v8 = vor.u32 %v2692_v5, %v2541_v7  ;;  %v2531_v9 = vld [vmem:[%s3676_s16 + $0x10] sm:$0xf]  ;;  %v2691_v10 = vld [vmem:[%s3676_s16 + $0x14] sm:$0xf0]  ;;  %v2690_v11 = vld [vmem:[%s3676_s16 + $0x14] sm:$0xf] }
 0x6f3   : > { %v1586_v14 = vpack.c.bf16 %v1585_v13, %v1584_v12  ;;  %v2532_v12 = vor.u32 %v2691_v10, %v2531_v9  ;;  %v2533_v13 = vld [vmem:[%s3676_s16 + $0x18] sm:$0xf0]  ;;  %v1750_v7 = vperm.slane %v1747_v46, 1 }
 0x6f4   : > { %1852 = vmatpush.bf16.msra.mxu3 %v2544_v8 }
 0x6f5   : > { %1663 = vmatmul.bf16.vlgmr.msrb.gmra.mxu1 %v1586_v14  ;;  %v2523_v14 = vld [vmem:[%s3676_s16] sm:$0xf]  ;;  %1839 = vmatpush.bf16.msrb.mxu2 %v2532_v12 }
 0x772   : > { %v1664_v17 = vpop.f32.mrf.mxu1 }
 0x773   : > { %v1665_v18 = vadd.f32 %v2871_v15, %v1664_v17 }
 0x775   : > { %v1669_v31 = vadd.f32 %v1665_v18, %v3772_v16  ;;  %v2536_v18 = vor.u32 %v2690_v11, %v2533_v13 }
 0x777   : > { %1671 = vadd.xlane.f32.xlu1 %v1669_v31  ;;  %1853 = vmatpush.bf16.msra.mxu3 %v2536_v18 }
 0x77a   : > { %v1666_v20 = vpop.f32.mrf.mxu1 }
 0x77b   : > { %v1667_v30 = vadd.f32 %v2871_v15, %v1666_v20  ;;  %v2689_v15 = vld [vmem:[%s3676_s16 + $0x4] sm:$0xf0]  ;;  %v2525_v20 = vld [vmem:[%s3676_s16 + $0x8] sm:$0xf0] }
 0x77d   : > { %v1670_v21 = vadd.f32 %v1667_v30, %v3774_v19 }
 0x77f   : > { %1673 = vadd.xlane.f32.xlu2 %v1670_v21 }
 0x7ea   : > { %v1672_v16 = vpop.xlane.xlu1 %1671 }
 0x7eb   : > { %v1682_v29 = vmul.f32 %v3897_v28, %v1672_v16  ;;  %v2710_v16 = vld [vmem:[%s3685_s29 + $0x30] sm:$0xff] }
 0x7ec   : > { %2000 = vmatpush.bf16.msrb.mxu0 %v2710_v16 }
 0x7ed   : > { %v3900_v32 = vsub.f32 %v1669_v31, %v1682_v29  ;;  %v2688_v31 = vld [vmem:[%s3676_s16 + $0x4] sm:$0xf]  ;;  %v2718_v29 = vld [vmem:[%s3685_s29 + $0x70] sm:$0xff]  ;;  %s4060_s16 = scalar_lea.vmem [#allocation8], %s3657_s24  ;;  %s3321_s24 = smov 128  }
 0x7ee   : > { %v2528_v22 = vor.u32 %v2688_v31, %v2525_v20  ;;  %2014 = vmatpush.bf16.msra.mxu1 %v2718_v29  ;;  %v2872_v54 = vld [vmem:[%s4060_s16] ss:$0 sm:$0xff] }
 0x7ef   : > { %v1686_v19 = vmul.f32 %v3900_v32, %v3900_v32 }
 0x7f0   : > { %1854 = vmatpush.bf16.msra.mxu3 %v2528_v22 }
 0x7f1   : > { %1688 = vadd.xlane.f32.xlu0 %v1686_v19 }
 0x7f2   : > { %v1674_v33 = vpop.xlane.xlu2 %1673  ;;  %2015 = vmatpush.bf16.msra.mxu1 %v2717_v37 }
 0x7f3   : > { %v1683_v34 = vmul.f32 %v3897_v28, %v1674_v33 }
 0x7f5   : > { %v3905_v35 = vsub.f32 %v1670_v21, %v1683_v34  ;;  %v2524_v21 = vor.u32 %v2689_v15, %v2523_v14 }
 0x7f6   : > { %2016 = vmatpush.bf16.msra.mxu1 %v2716_v41 }
 0x7f7   : > { %v1687_v36 = vmul.f32 %v3905_v35, %v3905_v35  ;;  %1840 = vmatpush.bf16.msrb.mxu2 %v2524_v21 }
 0x7f9   : > { %1690 = vadd.xlane.f32.xlu2 %v1687_v36  ;;  %v2709_v36 = vld [vmem:[%s3685_s29 + $0x28] sm:$0xff] }
 0x7fa   : > { %2001 = vmatpush.bf16.msrb.mxu0 %v2709_v36  ;;  %2017 = vmatpush.bf16.msra.mxu1 %v2715_v63 }
 0x7fe   : > { %2002 = vmatpush.bf16.msrb.mxu0 %v2708_v40 }
 0x802   : > { %2003 = vmatpush.bf16.msrb.mxu0 %v2707_v62 }
 0x806   : > { %2004 = vmatpush.bf16.msrb.mxu0 %v2706_v0 }
 0x80a   : > { %2005 = vmatpush.bf16.msrb.mxu0 %v2705_v1 }
 0x80e   : > { %2006 = vmatpush.bf16.msrb.mxu0 %v2704_v3 }
 0x864   : > { %v1689_v17 = vpop.xlane.xlu0 %1688 }
 0x865   : > { %v1692_v30 = vmul.f32 %v1689_v17, %v3897_v28 }
 0x867   : > { %v1694_v23 = vadd.f32 1e-05, %v1692_v30  ;;  %v2874_v30 = vld [vmem:[%s4062_s7] ss:$0 sm:$0xff] }
 0x869   : > { %2911 = vrsqrt.f32 %v1694_v23  ;;  %vm1702_vm9 = vweird.f32 %v1694_v23 }
 0x86c   : > { %v1691_v26 = vpop.xlane.xlu2 %1690 }
 0x86d   : > { %v1693_v27 = vmul.f32 %v1691_v26, %v3897_v28 }
 0x86f   : > { %v2912_v19 = vpop.eup %2911  ;;  %v1695_v33 = vadd.f32 1e-05, %v1693_v27 }
 0x870   : > { %v1697_v34 = vmul.f32 %v2912_v19, %v1694_v23  ;;  %vm1703_vm8 = vweird.f32 %v2912_v19 }
 0x871   : > { %2913 = vrsqrt.f32 %v1695_v33  ;;  %vm1704_vm10 = vmor %vm1702_vm9, %vm1703_vm8  ;;  %vm1712_vm12 = vweird.f32 %v1695_v33 }
 0x872   : > { %v1698_v38 = vmul.f32 %v2912_v19, %v1697_v34 }
 0x874   : > { %v1699_v39 = vmul.f32 0.5, %v1698_v38 }
 0x876   : > { %v1700_v42 = vsub.f32 1.5, %v1699_v39 }
 0x877   : > { %v2914_v43 = vpop.eup %2913 }
 0x878   : > { %v1701_v44 = vmul.f32 %v2912_v19, %v1700_v42  ;;  %v1707_v47 = vmul.f32 %v2914_v43, %v1695_v33  ;;  %vm1713_vm11 = vweird.f32 %v2914_v43 }
 0x879   : > { %vm1714_vm13 = vmor %vm1712_vm12, %vm1713_vm11 }
 0x87a   : > { %v1708_v48 = vmul.f32 %v2914_v43, %v1707_v47  ;;  %v1705_v49 = vsel %vm1704_vm10, %v2912_v19, %v1701_v44 }
 0x87b   : > { %v1716_v52 = vmul.f32 %v1705_v49, %v3900_v32 }
 0x87c   : > { %v1709_v50 = vmul.f32 0.5, %v1708_v48 }
 0x87d   : > { %v1722_v58 = vmul.f32 %v2872_v54, %v1716_v52 }
 0x87e   : > { %v1710_v51 = vsub.f32 1.5, %v1709_v50 }
 0x87f   : > { %v1728_v61 = vadd.f32 %v2873_v59, %v1722_v58 }
 0x880   : > { %v1711_v55 = vmul.f32 %v2914_v43, %v1710_v51 }
 0x882   : > { %v1715_v56 = vsel %vm1714_vm13, %v2914_v43, %v1711_v55 }
 0x883   : > { %v1717_v57 = vmul.f32 %v1715_v56, %v3905_v35  ;;  %v2714_v35 = vld [vmem:[%s3685_s29 + $0x50] sm:$0xff] }
 0x884   : > { %2018 = vmatpush.bf16.msra.mxu1 %v2714_v35 }
 0x885   : > { %v1723_v60 = vmul.f32 %v2872_v54, %v1717_v57 }
 0x887   : > { %v1729_v53 = vadd.f32 %v2873_v59, %v1723_v60  ;;  %v2875_v59 = vld [vmem:[%s884_s0] ss:$0 sm:$0xff]  ;;  %s2088_s0 = sshll.u32 %s3320_s15, 4  ;;  %s2089_s0 = int_to_ptr.vmem [resolvable:$true] %s2088_s0 }
 0x888   : > { %2019 = vmatpush.bf16.msra.mxu1 %v2713_v2 }
 0x889   : > { %v1730_v32 = vpack.c.bf16 %v1729_v53, %v1728_v61 }
 0x88b   : > { %1841 = vmatmul.bf16.vlgmr.msrb.gmra.mxu2 %v1730_v32  ;;  %1855 = vmatmul.bf16.vlgmr.msra.gmra.mxu3 %v1730_v32 }
 0x88c   : > { %2020 = vmatpush.bf16.msra.mxu1 %v2712_v45 }
 0x90e   : > { %v1842_v4 = vpop.f32.mrf.mxu2  ;;  %v1856_v5 = vpop.f32.mrf.mxu3 }
 0x90f   : > { %v1843_v8 = vadd.f32 %v1842_v4, %v1749_v6  ;;  %v1857_v9 = vadd.f32 %v1856_v5, %v1750_v7 }
 0x911   : > { %v1861_v14 = vmax.f32 %v1843_v8, 0.0  ;;  %v1862_v15 = vmax.f32 %v1857_v9, 0.0 }
 0x916   : > { %v1844_v10 = vpop.f32.mrf.mxu2  ;;  %v1858_v11 = vpop.f32.mrf.mxu3 }
 0x917   : > { %v1845_v12 = vadd.f32 %v1844_v10, %v1749_v6  ;;  %v1859_v13 = vadd.f32 %v1858_v11, %v1750_v7 }
 0x919   : > { %v1863_v17 = vmax.f32 %v1845_v12, 0.0  ;;  %v1864_v18 = vmax.f32 %v1859_v13, 0.0 }
 0x91b   : > { %v1865_v31 = vpack.c.bf16 %v1863_v17, %v1861_v14  ;;  %v1866_v20 = vpack.c.bf16 %v1864_v18, %v1862_v15 }
 0x91d   : > { %2007 = vmatmul.bf16.vlgmr.msrb.gmra.mxu0 %v1865_v31  ;;  %2021 = vmatmul.bf16.vlgmr.msra.gmra.mxu1 %v1866_v20 }
 0x99a   : > { %v2008_v21 = vpop.f32.mrf.mxu0  ;;  %v2022_v22 = vpop.f32.mrf.mxu1 }
 0x99b   : > { %v2009_v23 = vadd.f32 %v2874_v30, %v2008_v21 }
 0x99d   : > { %v2023_v24 = vadd.f32 %v2022_v22, %v2009_v23 }
 0x99f   : > { %v2027_v25 = vadd.f32 %v2023_v24, %v1728_v61 }
 0x9a1   : > { %2029 = vadd.xlane.f32.xlu2 %v2027_v25 }
 0x9a2   : > { %v2010_v26 = vpop.f32.mrf.mxu0  ;;  %v2024_v16 = vpop.f32.mrf.mxu1 }
 0x9a3   : > { %v2011_v27 = vadd.f32 %v2874_v30, %v2010_v26 }
 0x9a5   : > { %v2025_v29 = vadd.f32 %v2024_v16, %v2011_v27 }
 0x9a7   : > { %v2028_v19 = vadd.f32 %v2025_v29, %v1729_v53  ;;  %v2876_v53 = vld [vmem:[%s4064_s18] ss:$0 sm:$0xff] }
 0x9a9   : > { %2031 = vadd.xlane.f32.xlu2 %v2028_v19 }
 0xa14   : > { %v2030_v33 = vpop.xlane.xlu2 %2029 }
 0xa15   : > { %v2033_v34 = vmul.f32 %v2030_v33, %v3897_v28 }
 0xa17   : > { %v2035_v36 = vsub.f32 %v2027_v25, %v2033_v34 }
 0xa19   : > { %v2037_v37 = vmul.f32 %v2035_v36, %v2035_v36 }
 0xa1b   : > { %2039 = vadd.xlane.f32.xlu1 %v2037_v37 }
 0xa1c   : > { %v2032_v38 = vpop.xlane.xlu2 %2031 }
 0xa1d   : > { %v2034_v39 = vmul.f32 %v2032_v38, %v3897_v28 }
 0xa1f   : > { %v2036_v40 = vsub.f32 %v2028_v19, %v2034_v39 }
 0xa21   : > { %v2038_v41 = vmul.f32 %v2036_v40, %v2036_v40 }
 0xa23   : > { %2041 = vadd.xlane.f32.xlu2 %v2038_v41 }
 0xa8e   : > { %v2040_v42 = vpop.xlane.xlu1 %2039 }
 0xa8f   : > { %v2043_v43 = vmul.f32 %v2040_v42, %v3897_v28 }
 0xa91   : > { %v2045_v44 = vadd.f32 1e-05, %v2043_v43 }
 0xa93   : > { %2915 = vrsqrt.f32 %v2045_v44  ;;  %vm2053_vm15 = vweird.f32 %v2045_v44 }
 0xa96   : > { %v2042_v47 = vpop.xlane.xlu2 %2041 }
 0xa97   : > { %v2044_v48 = vmul.f32 %v2042_v47, %v3897_v28 }
 0xa99   : > { %v2916_v49 = vpop.eup %2915  ;;  %v2046_v50 = vadd.f32 1e-05, %v2044_v48 }
 0xa9a   : > { %v2048_v51 = vmul.f32 %v2916_v49, %v2045_v44  ;;  %vm2054_vm14 = vweird.f32 %v2916_v49 }
 0xa9b   : > { %2917 = vrsqrt.f32 %v2046_v50  ;;  %vm2055_vm0 = vmor %vm2053_vm15, %vm2054_vm14  ;;  %vm2063_vm2 = vweird.f32 %v2046_v50 }
 0xa9c   : > { %v2049_v52 = vmul.f32 %v2916_v49, %v2048_v51 }
 0xa9e   : > { %v2050_v54 = vmul.f32 0.5, %v2049_v52 }
 0xaa0   : > { %v2051_v55 = vsub.f32 1.5, %v2050_v54 }
 0xaa1   : > { %v2918_v56 = vpop.eup %2917 }
 0xaa2   : > { %v2052_v57 = vmul.f32 %v2916_v49, %v2051_v55  ;;  %v2058_v58 = vmul.f32 %v2918_v56, %v2046_v50  ;;  %vm2064_vm1 = vweird.f32 %v2918_v56 }
 0xaa3   : > { %vm2065_vm3 = vmor %vm2063_vm2, %vm2064_vm1 }
 0xaa4   : > { %v2056_v28 = vsel %vm2055_vm0, %v2916_v49, %v2052_v57  ;;  %v2059_v60 = vmul.f32 %v2918_v56, %v2058_v58 }
 0xaa5   : > { %v2067_v61 = vmul.f32 %v2056_v28, %v2035_v36 }
 0xaa6   : > { %v2060_v32 = vmul.f32 0.5, %v2059_v60 }
 0xaa7   : > { %v2073_v62 = vmul.f32 %v2875_v59, %v2067_v61 }
 0xaa8   : > { %v2061_v63 = vsub.f32 1.5, %v2060_v32 }
 0xaa9   : > { %v2079_v0 = vadd.f32 %v2876_v53, %v2073_v62 }
 0xaaa   : > { %v2062_v35 = vmul.f32 %v2918_v56, %v2061_v63 }
 0xaab   : > { %2081 = vst [vmem:[#allocation19] sm:$0xff] %v2079_v0 }
 0xaac   : > { %v2066_v1 = vsel %vm2065_vm3, %v2918_v56, %v2062_v35 }
 0xaad   : > { %v2068_v2 = vmul.f32 %v2066_v1, %v2036_v40 }
 0xaaf   : > { %v2074_v3 = vmul.f32 %v2875_v59, %v2068_v2 }
 0xab1   : > { %v2080_v45 = vadd.f32 %v2876_v53, %v2074_v3 }
 0xab3   : > { %2082 = vst [vmem:[#allocation19 + $0x8] sm:$0xff] %v2080_v45 }
 0xab4   : > { %2751 = dma.vmem_to_hbm [thread:$0]  (%p2789_p7), %s2089_s0, 256, %s2091_s5, [#allocation4], %s3321_s24, %s3321_s24, %s3322_s17  }
 0xab5   : > { %3288 = dma.done.wait (%p2789_p7), [#allocation4], 256  }
 0xab6   : > { %3290 = vsyncadd (%p2789_p7), [#allocation4], 4294967040 }
 0xab7 PF: > { %s4066_s24 = sld [smem:[#allocation28_spill]]  ;;  %s4069_s21 = smov %s3297_s22 }
 0xab8   : > { %s4067_s25 = sld [smem:[#allocation27_spill]] }
 0xab9   : > { %s4068_s23 = sld [smem:[#allocation29_spill]] }
 0xabd   : > { %p40_p12 = scmp.ge.s32.totalorder %s4066_s24, 4  }
 0xabe   : > { %s4070_s22 = smov %s4067_s25 }
 0xabf   :  { %42 = sbr.rel (!%p40_p12) target bundleno = 26 (0x1a), region = 235 }
 0xac4   :  { %2107 = vsyncpa [#allocation3], 1 }
 0xac5   :  { %2109 = vsyncpa [#allocation3 + $0x1], 1 }
 0xac6   :  { %2110 = vsyncpa [#allocation6], 1 }
 0xac7   :  { %2112 = vsyncpa [#allocation6 + $0x1], 1 }
 0xac8   :  { %2113 = vsyncpa [#allocation9], 1 }
 0xac9   :  { %2115 = vsyncpa [#allocation9 + $0x1], 1 }
 0xaca   :  { %2116 = vsyncpa [#allocation12], 1 }
 0xacb   :  { %2118 = vsyncpa [#allocation12 + $0x1], 1 }
 0xacc   :  { %2119 = vsyncpa [#allocation15], 1 }
 0xacd   :  { %2121 = vsyncpa [#allocation15 + $0x1], 1 }
 0xace   :  { %2122 = vsyncpa [#allocation18], 1 }
 0xacf   :  { %2124 = vsyncpa [#allocation18 + $0x1], 1 }
 0xad0   :  { %2125 = vsyncpa [#allocation4], 1 }
 0xad1   :  { %2127 = vsyncpa [#allocation4 + $0x1], 1 }

</bundles_post_ra>
